<compile_context>
chip_gen: v7x
topology: tpu7x:2x2x1
jax: 0.10.0
libtpu: 0.0.40
codegen_flags: <defaults>
</compile_context>

<pallas_src>
import jax
import jax.numpy as jnp
from jax import lax
from jax.experimental import pallas as pl
from jax.experimental.pallas import tpu as pltpu

LANE = 128


def _round_up(x, m):
    return ((x + m - 1) // m) * m


def _pad2d(a, rows, cols):
    return jnp.pad(a, ((0, rows - a.shape[0]), (0, cols - a.shape[1])))


# ----------------------------------------------------------------- pass 1
def graphconv_kernel(adj_ref, xs_ref, ndst_ref, w1_ref, b1_ref, h_ref, acc_ref):
    """h = relu( (D_in^{-1/2} * (A @ Xs)) @ W1 + b1 ), Xs pre-scaled bf16."""
    k = pl.program_id(1)

    @pl.when(k == 0)
    def _():
        acc_ref[...] = jnp.zeros_like(acc_ref)

    # Partial A @ Xs over this source-column tile (bf16 MXU, f32 accumulate).
    acc_ref[...] += jnp.dot(adj_ref[...], xs_ref[...],
                            preferred_element_type=jnp.float32)

    @pl.when(k == pl.num_programs(1) - 1)
    def _():
        a = (acc_ref[...] * ndst_ref[...]).astype(jnp.bfloat16)
        h1 = jnp.dot(a, w1_ref[...],
                     preferred_element_type=jnp.float32) + b1_ref[...]
        h_ref[...] = jnp.maximum(h1, 0.0).astype(h_ref.dtype)   # bf16 out


# ----------------------------------------------------------------- pass 2
def sage_kernel(adj_ref, hsrc_ref, invdeg_ref, wcat_ref, b2_ref,
                out_ref, acc_ref, hdst_ref):
    """out = [H(dst), (A @ H) * 1/max(deg_in,1)] @ [W_self; W_neigh] + b2."""
    i = pl.program_id(0)
    k = pl.program_id(1)

    @pl.when(k == 0)
    def _():
        acc_ref[...] = jnp.zeros_like(acc_ref)

    # Diagonal source block == destination rows: stash it for the finalize
    # step instead of streaming a second copy of H from HBM.
    @pl.when(k == i)
    def _():
        hdst_ref[...] = hsrc_ref[...]

    acc_ref[...] += jnp.dot(adj_ref[...], hsrc_ref[...],
                            preferred_element_type=jnp.float32)

    @pl.when(k == pl.num_programs(1) - 1)
    def _():
        h_neigh = (acc_ref[...] * invdeg_ref[...]).astype(jnp.bfloat16)
        h_cat = jnp.concatenate([hdst_ref[...], h_neigh], axis=-1)
        out = jnp.dot(h_cat, wcat_ref[...],
                      preferred_element_type=jnp.float32) + b2_ref[...]
        out_ref[...] = out.astype(out_ref.dtype)


# ----------------------------------------------------------------- wrapper
def prepare_graph(adj, *, block=256):
    """One-time graph preprocessing: padded bf16 adjacency + degree norms.
    Hoisted out of the forward so it is amortized when A is reused."""
    n = adj.shape[0]
    adj = adj.astype(jnp.float32)
    deg_in = jnp.sum(adj, axis=1, keepdims=True)            # (N,1) in-degree (dst)
    deg_out = jnp.sum(adj, axis=0)[:, None]                 # (N,1) out-degree (src)
    norm_dst = lax.rsqrt(jnp.maximum(deg_in, 1.0))
    norm_src = lax.rsqrt(jnp.maximum(deg_out, 1.0))
    inv_deg = 1.0 / jnp.maximum(deg_in, 1.0)

    n_pad = _round_up(n, block)
    n_tiles = n_pad // block
    if n_tiles > 1 and n_tiles % 2:                          # even tiles -> balanced
        n_pad += block                                       # 2-TC sharding on v7x

    return dict(
        n=n, n_pad=n_pad, block=block,
        adj_p=_pad2d(adj, n_pad, n_pad).astype(jnp.bfloat16),   # 0/1: exact in bf16
        nsrc=norm_src,                                          # (n,1) f32, scales X
        ndst_p=_pad2d(norm_dst, n_pad, 1),
        invd_p=_pad2d(inv_deg, n_pad, 1),
    )


def _vmem_need_bytes(block, fin_p, hid_p, fout_p):
    """Rough double-buffered footprint of the larger of the two passes."""
    bf, f32 = 2, 4
    pass1 = (2 * block * block * bf + 2 * block * fin_p * bf
             + 2 * block * f32 + 2 * fin_p * hid_p * bf + 2 * hid_p * f32
             + 2 * block * hid_p * bf + block * fin_p * f32)
    pass2 = (2 * block * block * bf + 2 * block * hid_p * bf
             + 2 * block * f32 + 2 * 2 * hid_p * fout_p * bf + 2 * fout_p * f32
             + 2 * block * fout_p * f32 + block * hid_p * f32
             + block * hid_p * bf)
    return max(pass1, pass2)


def gcn_forward(graph, x, w1, b1, w_self, w_neigh, b2):
    """Dense-adjacency GCN forward on a graph prepared by prepare_graph()."""
    n, n_pad, block = graph["n"], graph["n_pad"], graph["block"]
    adj_p, ndst_p, invd_p = graph["adj_p"], graph["ndst_p"], graph["invd_p"]

    in_feats = x.shape[1]
    hid_feats = w1.shape[1]
    out_feats = w_self.shape[1]

    fin_p = _round_up(in_feats, LANE)
    hid_p = _round_up(hid_feats, LANE)
    fout_p = _round_up(out_feats, LANE)

    # Pre-scaled, bf16 source features (scale in f32, cast once).
    xs = x.astype(jnp.float32) * graph["nsrc"]
    xs_p = _pad2d(xs, n_pad, fin_p).astype(jnp.bfloat16)

    w1_p = _pad2d(w1, fin_p, hid_p).astype(jnp.bfloat16)
    b1_p = _pad2d(b1.reshape(1, -1), 1, hid_p).astype(jnp.float32)
    ws_p = _pad2d(w_self, hid_p, fout_p)
    wn_p = _pad2d(w_neigh, hid_p, fout_p)
    wcat_p = jnp.concatenate([ws_p, wn_p], axis=0).astype(jnp.bfloat16)  # (2*hid_p, fout_p)
    b2_p = _pad2d(b2.reshape(1, -1), 1, fout_p).astype(jnp.float32)

    n_tiles = n_pad // block
    grid = (n_tiles, n_tiles)

    # Explicit VMEM budget: only raise above the smallest (v5e, 16 MiB) scoped
    # default when needed; cap at 64 MiB so it stays legal on v7x.
    need = int(1.25 * _vmem_need_bytes(block, fin_p, hid_p, fout_p)) + (2 << 20)
    vmem_limit = None if need <= (16 << 20) else min(need, 64 << 20)
    cparams = pltpu.CompilerParams(
        dimension_semantics=("parallel", "arbitrary"),
        vmem_limit_bytes=vmem_limit)

    # ---- pass 1: GraphConv(norm='both') + ReLU -> h (n_pad, hid_p) bf16 ----
    h = pl.pallas_call(
        graphconv_kernel,
        out_shape=jax.ShapeDtypeStruct((n_pad, hid_p), jnp.bfloat16),
        grid_spec=pltpu.PrefetchScalarGridSpec(
            num_scalar_prefetch=0,
            grid=grid,
            in_specs=[
                pl.BlockSpec((block, block), lambda i, k: (i, k)),   # A tile
                pl.BlockSpec((block, fin_p), lambda i, k: (k, 0)),   # Xs (src rows, bf16)
                pl.BlockSpec((block, 1), lambda i, k: (i, 0)),       # rsqrt(deg_in)
                pl.BlockSpec((fin_p, hid_p), lambda i, k: (0, 0)),   # W1
                pl.BlockSpec((1, hid_p), lambda i, k: (0, 0)),       # b1
            ],
            out_specs=pl.BlockSpec((block, hid_p), lambda i, k: (i, 0)),
            scratch_shapes=[pltpu.VMEM((block, fin_p), jnp.float32)],
        ),
        compiler_params=cparams,
    )(adj_p, xs_p, ndst_p, w1_p, b1_p)

    # ---- pass 2: SAGEConv(mean) -> out (n_pad, fout_p) f32 ----
    out_p = pl.pallas_call(
        sage_kernel,
        out_shape=jax.ShapeDtypeStruct((n_pad, fout_p), jnp.float32),
        grid_spec=pltpu.PrefetchScalarGridSpec(
            num_scalar_prefetch=0,
            grid=grid,
            in_specs=[
                pl.BlockSpec((block, block), lambda i, k: (i, k)),       # A tile
                pl.BlockSpec((block, hid_p), lambda i, k: (k, 0)),       # H (src rows, bf16)
                pl.BlockSpec((block, 1), lambda i, k: (i, 0)),           # 1/deg_in
                pl.BlockSpec((2 * hid_p, fout_p), lambda i, k: (0, 0)),  # [W_self; W_neigh]
                pl.BlockSpec((1, fout_p), lambda i, k: (0, 0)),          # b2
            ],
            out_specs=pl.BlockSpec((block, fout_p), lambda i, k: (i, 0)),
            scratch_shapes=[pltpu.VMEM((block, hid_p), jnp.float32),     # A@H accumulator
                            pltpu.VMEM((block, hid_p), jnp.bfloat16)],   # H(dst) stash
        ),
        compiler_params=cparams,
    )(adj_p, h, invd_p, wcat_p, b2_p)

    return out_p[:n, :out_feats]


def gcn_reference(adj, x, w1, b1, w_self, w_neigh, b2):
    """Pure-JAX reference with matching bf16-input / f32-accumulate matmuls."""
    f32, bf = jnp.float32, jnp.bfloat16
    deg_in = jnp.maximum(jnp.sum(adj, axis=1, keepdims=True), 1.0)
    deg_out = jnp.maximum(jnp.sum(adj, axis=0)[:, None], 1.0)
    adj_b = adj.astype(bf)
    xs = (x * lax.rsqrt(deg_out)).astype(bf)
    agg = jnp.dot(adj_b, xs, preferred_element_type=f32)
    h1 = jnp.dot((agg * lax.rsqrt(deg_in)).astype(bf), w1.astype(bf),
                 preferred_element_type=f32) + b1.reshape(1, -1)
    h = jnp.maximum(h1, 0.0).astype(bf)
    neigh = (jnp.dot(adj_b, h, preferred_element_type=f32)
             * (1.0 / deg_in)).astype(bf)
    out = (jnp.dot(h, w_self.astype(bf), preferred_element_type=f32)
           + jnp.dot(neigh, w_neigh.astype(bf), preferred_element_type=f32)
           + b2.reshape(1, -1))
    return out


if __name__ == "__main__":
    key = jax.random.PRNGKey(0)
    n_nodes = 300                       # padded to 512 -> 2x2 grid of 256 tiles
    in_feats, hid_feats, out_feats = 8, 32, 16

    k_adj, k_x, k_w1, k_b1, k_ws, k_wn, k_b2 = jax.random.split(key, 7)

    # Deterministic synthetic directed graph, no self-loops.
    adj = (jax.random.uniform(k_adj, (n_nodes, n_nodes)) < 0.05).astype(jnp.float32)
    adj = adj * (1.0 - jnp.eye(n_nodes, dtype=jnp.float32))

    x = jax.random.normal(k_x, (n_nodes, in_feats), dtype=jnp.float32)
    w1 = jax.random.normal(k_w1, (in_feats, hid_feats), dtype=jnp.float32) * 0.1
    b1 = jax.random.normal(k_b1, (hid_feats,), dtype=jnp.float32) * 0.1
    w_self = jax.random.normal(k_ws, (hid_feats, out_feats), dtype=jnp.float32) * 0.1
    w_neigh = jax.random.normal(k_wn, (hid_feats, out_feats), dtype=jnp.float32) * 0.1
    b2 = jax.random.normal(k_b2, (out_feats,), dtype=jnp.float32) * 0.1

    graph = prepare_graph(adj, block=256)        # one-time preprocessing
    out = gcn_forward(graph, x, w1, b1, w_self, w_neigh, b2)
    jax.block_until_ready(out)
    assert out.shape == (n_nodes, out_feats)

    ref = gcn_reference(adj, x, w1, b1, w_self, w_neigh, b2)
    max_err = float(jnp.max(jnp.abs(out - ref)))
    assert jnp.allclose(out, ref, atol=2e-3, rtol=2e-3), f"mismatch: {max_err}"

    print("KERNEL_OK")
</pallas_src>

<mosaic_0001>
module attributes {stable_mosaic.version = 11 : i64} {
  func.func @graphconv_kernel(%arg0: i32, %arg1: i32, %arg2: memref<256x256xbf16, #tpu.memory_space<vmem>>, %arg3: memref<256x128xbf16, #tpu.memory_space<vmem>>, %arg4: memref<256x1xf32, #tpu.memory_space<vmem>>, %arg5: memref<128x128xbf16, #tpu.memory_space<vmem>>, %arg6: memref<1x128xf32, #tpu.memory_space<vmem>>, %arg7: memref<256x128xbf16, #tpu.memory_space<vmem>>, %arg8: memref<256x128xf32, #tpu.memory_space<vmem>>) attributes {dimension_semantics = [#tpu.dimension_semantics<parallel>, #tpu.dimension_semantics<arbitrary>], iteration_bounds = array<i64: 2, 2>, scalar_prefetch = 0 : i64, scratch_operands = 1 : i64, tpu.core_type = #tpu.core_type<tc>, window_params = [{transform_indices = @transform_0, window_bounds = array<i64: 256, 256>}, {transform_indices = @transform_1, window_bounds = array<i64: 256, 128>}, {transform_indices = @transform_2, window_bounds = array<i64: 256, 1>}, {pipeline_mode = #tpu.pipeline_mode<synchronous>, transform_indices = @transform_3, window_bounds = array<i64: 128, 128>}, {pipeline_mode = #tpu.pipeline_mode<synchronous>, transform_indices = @transform_4, window_bounds = array<i64: 1, 128>}, {transform_indices = @transform_5, window_bounds = array<i64: 256, 128>}]} {
    %c0_i32 = arith.constant 0 : i32
    %0 = arith.cmpi eq, %arg1, %c0_i32 : i32
    %1 = arith.extui %0 : i1 to i32
    %c0_i32_0 = arith.constant 0 : i32
    %2 = arith.cmpi ne, %1, %c0_i32_0 : i32
    scf.if %2 {
      %cst_9 = arith.constant 0.000000e+00 : f32
      %12 = vector.broadcast %cst_9 : f32 to vector<256x128xf32>
      %c0_10 = arith.constant 0 : index
      %c0_11 = arith.constant 0 : index
      %13 = vector.load %arg8[%c0_10, %c0_11] : memref<256x128xf32, #tpu.memory_space<vmem>>, vector<256x128xf32>
      tpu.vector_store %arg8[%c0_10, %c0_11], %12 {strides = array<i32>} : memref<256x128xf32, #tpu.memory_space<vmem>>, vector<256x128xf32>,
    } else {
    }
    %c0 = arith.constant 0 : index
    %c0_1 = arith.constant 0 : index
    %3 = vector.load %arg8[%c0, %c0_1] : memref<256x128xf32, #tpu.memory_space<vmem>>, vector<256x128xf32>
    %c0_2 = arith.constant 0 : index
    %c0_3 = arith.constant 0 : index
    %4 = vector.load %arg2[%c0_2, %c0_3] : memref<256x256xbf16, #tpu.memory_space<vmem>>, vector<256x256xbf16>
    %c0_4 = arith.constant 0 : index
    %c0_5 = arith.constant 0 : index
    %5 = vector.load %arg3[%c0_4, %c0_5] : memref<256x128xbf16, #tpu.memory_space<vmem>>, vector<256x128xbf16>
    %cst = arith.constant dense<0.000000e+00> : vector<256x128xf32>
    %6 = tpu.matmul %4, %5, %cst {dimension_numbers = #tpu.dot_dimension_numbers<[1], [0], [0], [1], [0, 0, 1, 1], [], []>} : vector<256x256xbf16>, vector<256x128xbf16>, vector<256x128xf32> -> vector<256x128xf32>
    %7 = arith.addf %3, %6 : vector<256x128xf32>
    %c0_6 = arith.constant 0 : index
    %c0_7 = arith.constant 0 : index
    %8 = vector.load %arg8[%c0_6, %c0_7] : memref<256x128xf32, #tpu.memory_space<vmem>>, vector<256x128xf32>
    tpu.vector_store %arg8[%c0_6, %c0_7], %7 {strides = array<i32>} : memref<256x128xf32, #tpu.memory_space<vmem>>, vector<256x128xf32>,
    %c1_i32 = arith.constant 1 : i32
    %9 = arith.cmpi eq, %arg1, %c1_i32 : i32
    %10 = arith.extui %9 : i1 to i32
    %c0_i32_8 = arith.constant 0 : i32
    %11 = arith.cmpi ne, %10, %c0_i32_8 : i32
    scf.if %11 {
      %c0_9 = arith.constant 0 : index
      %c0_10 = arith.constant 0 : index
      %12 = vector.load %arg8[%c0_9, %c0_10] : memref<256x128xf32, #tpu.memory_space<vmem>>, vector<256x128xf32>
      %c0_11 = arith.constant 0 : index
      %c0_12 = arith.constant 0 : index
      %13 = vector.load %arg4[%c0_11, %c0_12] : memref<256x1xf32, #tpu.memory_space<vmem>>, vector<256x1xf32>
      %14 = vector.broadcast %13 : vector<256x1xf32> to vector<256x128xf32>
      %15 = arith.mulf %12, %14 : vector<256x128xf32>
      %16 = arith.truncf %15 : vector<256x128xf32> to vector<256x128xbf16>
      %c0_13 = arith.constant 0 : index
      %c0_14 = arith.constant 0 : index
      %17 = vector.load %arg5[%c0_13, %c0_14] : memref<128x128xbf16, #tpu.memory_space<vmem>>, vector<128x128xbf16>
      %cst_15 = arith.constant dense<0.000000e+00> : vector<256x128xf32>
      %18 = tpu.matmul %16, %17, %cst_15 {dimension_numbers = #tpu.dot_dimension_numbers<[1], [0], [0], [1], [0, 0, 1, 1], [], []>} : vector<256x128xbf16>, vector<128x128xbf16>, vector<256x128xf32> -> vector<256x128xf32>
      %c0_16 = arith.constant 0 : index
      %c0_17 = arith.constant 0 : index
      %19 = vector.load %arg6[%c0_16, %c0_17] : memref<1x128xf32, #tpu.memory_space<vmem>>, vector<1x128xf32>
      %20 = vector.broadcast %19 : vector<1x128xf32> to vector<256x128xf32>
      %21 = arith.addf %18, %20 : vector<256x128xf32>
      %cst_18 = arith.constant 0.000000e+00 : f32
      %22 = vector.broadcast %cst_18 : f32 to vector<256x128xf32>
      %23 = arith.maximumf %21, %22 : vector<256x128xf32>
      %24 = arith.truncf %23 : vector<256x128xf32> to vector<256x128xbf16>
      %c0_19 = arith.constant 0 : index
      %c0_20 = arith.constant 0 : index
      %25 = vector.load %arg7[%c0_19, %c0_20] : memref<256x128xbf16, #tpu.memory_space<vmem>>, vector<256x128xbf16>
      tpu.vector_store %arg7[%c0_19, %c0_20], %24 {strides = array<i32>} : memref<256x128xbf16, #tpu.memory_space<vmem>>, vector<256x128xbf16>,
    } else {
    }
    return
  }
  func.func @transform_0(%arg0: i32, %arg1: i32) -> (i32, i32) {
    %c0_i32 = arith.constant 0 : i32
    return %arg0, %arg1 : i32, i32
  }
  func.func @transform_1(%arg0: i32, %arg1: i32) -> (i32, i32) {
    %c0_i32 = arith.constant 0 : i32
    %c0_i32_0 = arith.constant 0 : i32
    return %arg1, %c0_i32 : i32, i32
  }
  func.func @transform_2(%arg0: i32, %arg1: i32) -> (i32, i32) {
    %c0_i32 = arith.constant 0 : i32
    %c0_i32_0 = arith.constant 0 : i32
    return %arg0, %c0_i32 : i32, i32
  }
  func.func @transform_3(%arg0: i32, %arg1: i32) -> (i32, i32) {
    %c0_i32 = arith.constant 0 : i32
    %c0_i32_0 = arith.constant 0 : i32
    %c0_i32_1 = arith.constant 0 : i32
    return %c0_i32, %c0_i32_0 : i32, i32
  }
  func.func @transform_4(%arg0: i32, %arg1: i32) -> (i32, i32) {
    %c0_i32 = arith.constant 0 : i32
    %c0_i32_0 = arith.constant 0 : i32
    %c0_i32_1 = arith.constant 0 : i32
    return %c0_i32, %c0_i32_0 : i32, i32
  }
  func.func @transform_5(%arg0: i32, %arg1: i32) -> (i32, i32) {
    %c0_i32 = arith.constant 0 : i32
    %c0_i32_0 = arith.constant 0 : i32
    return %arg0, %c0_i32 : i32, i32
  }
}

</mosaic_0001>

<bundles_post_ra>
// kernel: tpu_custom_call.1
= control target key start
LH: loop header
LB: loop body
LE: loop exit
PB: predicated region body
PF: predicated region fallthrough
CT: control target
= control target key end

     0   :  { %s2981_s0 = inlined_call_operand.hbm [shape: bf16[512,512], index: 0, kind: input, shape index: {}]   ;;  %s2982_s1 = inlined_call_operand.vmem [shape: bf16[512,128], index: 1, kind: input, shape index: {}]   ;;  %s2983_s2 = inlined_call_operand.vmem [shape: f32[512,1], index: 2, kind: input, shape index: {}]   ;;  %s2984_s3 = inlined_call_operand.vmem [shape: bf16[128,128], index: 3, kind: input, shape index: {}]   ;;  %s2985_s4 = inlined_call_operand.vmem [shape: f32[1,128], index: 4, kind: input, shape index: {}]   ;;  %s2986_s5 = inlined_call_operand.hbm [shape: bf16[512,128], index: 5, kind: output, shape index: {}]  }
   0x1   :  { %2992 = sst [smem:[#allocation13_spill]] %s2986_s5 }
   0x2   :  { %10 = vsyncpa [#allocation4], 0 }
   0x3   :  { %12 = vsyncpa [#allocation4 + $0x1], 0 }
   0x4   :  { %13 = vsyncpa [#allocation5], 0 }
   0x5   :  { %15 = vsyncpa [#allocation5 + $0x1], 0  ;;  %s2579_s18 = smov 0   ;;  %s2581_s19 = smov 0  }
   0x6   :  { %s2583_s20 = smov 0   ;;  %s2585_s21 = smov 0  }
   0x7   :  { %s2587_s22 = smov 0   ;;  %s2589_s23 = smov 0  }
   0x8   :  { %s2591_s24 = smov 0   ;;  %s2593_s25 = smov 0  }
   0x9   :  { %s2595_s26 = smov 0   ;;  %s2597_s27 = smov 0  }
   0xa   :  { %s2599_s28 = smov 0  }
   0xb LB: > { %2993 = sst [smem:[#allocation9_spill]] %s2518_s23  ;;  %s1746_s29 = sadd.s32 4294967295, %s2538_s28   ;;  %s2538_s28 = sphi %s2599_s28, %s21_s28   ;;  %s2534_s27 = sphi %s2597_s27, %s3018_s27   ;;  %s2530_s26 = sphi %s2595_s26, %s3017_s26   ;;  %s2526_s25 = sphi %s2593_s25, %s3016_s25   ;;  %s2522_s24 = sphi %s2591_s24, %s3015_s24   ;;  %s2518_s23 = sphi %s2589_s23, %s3007_s23   ;;  %s2514_s22 = sphi %s2587_s22, %s3014_s22   ;;  %s2510_s21 = sphi %s2585_s21, %s3013_s21   ;;  %s2506_s20 = sphi %s2583_s20, %s3012_s20   ;;  %s2502_s19 = sphi %s2581_s19, %s3011_s19   ;;  %s2498_s18 = sphi %s2579_s18, %s3010_s18  }
   0xc   : > { %s1747_s30 = sadd.s32 4294967294, %s2538_s28   ;;  %s30_s6 = sadd.s32 1, %s2530_s26 }
   0xd   : > { %s33_s7 = sadd.s32 1, %s2534_s27  ;;  %p31_p0 = scmp.ge.s32.totalorder %s30_s6, 2 }
   0xe   : > { %s42_s8 = sadd.s32 1, %s2518_s23  ;;  %p49_p1 = scmp.ne.s32.totalorder %s2518_s23, %s2514_s22 }
   0xf   : > { %p50_p2 = scmp.eq.s32.totalorder %s2538_s28, 0  ;;  %s3020_s6 = smov (%p31_p0, %s30_s6), 0 }
  0x10   : > { %2994 = sst [smem:[#allocation10_spill]] %s3020_s6  ;;  %s3022_s7 = smov (!%p31_p0, %s33_s7), %s2534_s27 }
  0x11   : > { %s38_s9 = ssub.s32 %s2530_s26, %s3020_s6  ;;  %p2645_p3 = por %p50_p2, %p49_p1 }
  0x12   : > { %p35_p4 = scmp.ge.s32.totalorder %s3022_s7, 2  ;;  %p55_p5 = scmp.ne.s32.totalorder %s2514_s22, %s2510_s21 }
  0x13   : > { %p56_p6 = scmp.eq.s32.totalorder %s1746_s29, 0  ;;  %s162_s11 = sadd.s32 1, %s2506_s20 }
  0x14   : > { %s3024_s7 = smov (%p35_p4, %s3022_s7), 0  ;;  %p172_p8 = scmp.ne.s32.totalorder %s2506_s20, %s2502_s19 }
  0x15   : > { %2996 = sst [smem:[#allocation11_spill]] %s3024_s7  ;;  %p2653_p7 = por %p56_p6, %p55_p5 }
  0x16   : > { %s37_s13 = ssub.s32 %s2534_s27, %s3024_s7  ;;  %p173_p9 = scmp.eq.s32.totalorder %s1746_s29, 3 }
  0x17   : > { %s39_s14 = sor.u32 %s38_s9, %s37_s13  ;;  %p160_p10 = scmp.eq.s32.totalorder %s37_s13, 0 }
  0x18   : > { %p40_p11 = scmp.eq.s32.totalorder %s39_s14, 0  ;;  %p2661_p12 = por %p173_p9, %p172_p8 }
  0x19   : > { %s2666_s16 = scalar_select %p160_p10, %s2506_s20, %s162_s11  }
  0x1a   : > { %s2998_s15 = scalar_select %p2661_p12, 1, 0 }
  0x1b   : > { %s2669_s17 = scalar_select %p40_p11, %s2518_s23, %s42_s8  }
  0x1c   : > { %p178_p13 = scmp.ne.s32.totalorder %s2502_s19, %s2498_s18  ;;  %p179_p0 = scmp.eq.s32.totalorder %s1747_s30, 3 }
  0x1d   : > { %2999 = sst [smem:[#allocation12_spill]] %s2669_s17  ;;  %p2215_p1 = scmp.lt.s32.totalorder %s2538_s28, 4 }
  0x1e   : > { %p2674_p2 = por %p179_p0, %p178_p13  ;;  %s205_s29 = sand.u32 1, %s2518_s23  }
  0x1f   : > { %s1750_s9 = sshll.u32 %s205_s29, 8  ;;  %s1752_s13 = sshll.u32 %s2530_s26, 1 }
  0x20   : > { %s3000_s21 = scalar_select %p2674_p2, 1, 0 }
  0x21   : > { %s1858_s14 = sshll.u32 %s2534_s27, 7  ;;  %s209_s7 = scalar_lea.vmem [#allocation3], %s1750_s9 }
  0x22   : > { %s219_s6 = sshll.u32 %s209_s7, 4  ;;  %s216_s5 = sadd.s32 %s1858_s14, %s1752_s13  ;;  %s2681_s6 = int_to_ptr.vmem [resolvable:$true] %s219_s6 }
  0x23   : > { %s1754_s11 = sshll.u32 %s216_s5, 6  ;;  %p2685_p4 = pnand %p2215_p1, %p2645_p3 }
  0x24   : > { %s2692_s23 = scalar_lea.hbm %s2981_s0, %s1754_s11  ;;  %s2695_s7 = scalar_lea.sflag [#allocation4], %s205_s29 }
  0x25   : > { %s2386_s5 = scalar_lea.hbm %s2692_s23, 4096  ;;  %p2388_p3 = pneg %p2685_p4 }
  0x26   : > { %p2387_p6 = scmp.ne.s32.totalorder %s2692_s23, %s2386_s5  ;;  %s2391_s9 = scalar_lea.hbm %s2981_s0, 16384 }
  0x27   : > { %p2392_p10 = scmp.lt.u32.totalorder %s2692_s23, %s2981_s0  ;;  %p2393_p11 = scmp.lt.u32.totalorder %s2391_s9, %s2386_s5 }
  0x28   : > { %p2389_p8 = pnand %p2388_p3, %p2387_p6  ;;  %p2395_p0 = scmp.lt.u32.totalorder %s2386_s5, %s2692_s23 }
  0x29   : > { %p2394_p13 = por %p2393_p11, %p2392_p10 }
  0x2a   : > { %p2390_p9 = pneg %p2389_p8 }
  0x2b   : > { %p2396_p1 = por %p2395_p0, %p2394_p13 }
  0x2d   : > { %p2397_p5 = pnand %p2396_p1, %p2390_p9 }
  0x2f   : > { %2400 = shalt.err (!%p2397_p5)
}
  0x30   : > { %s2401_s29 = scalar_lea.vmem %s2681_s6, 4096  ;;  %s2540_s11 = smov [#allocation3]  }
  0x31   : > { %p2402_p6 = scmp.ne.s32.totalorder %s2681_s6, %s2401_s29  ;;  %s2406_s30 = sshll.u32 %s2540_s11, 4  ;;  %s2407_s30 = int_to_ptr.vmem [resolvable:$false] %s2406_s30 }
  0x32   : > { %s2408_s10 = scalar_lea.vmem %s2407_s30, 8192  ;;  %p2409_p12 = scmp.lt.s32.totalorder %s2681_s6, %s2407_s30 }
  0x33   : > { %p2404_p8 = pnand %p2402_p6, %p2388_p3  ;;  %p2410_p10 = scmp.lt.s32.totalorder %s2408_s10, %s2401_s29 }
  0x35   : > { %p2405_p2 = pneg %p2404_p8  ;;  %p2411_p11 = por %p2410_p10, %p2409_p12 }
  0x37   : > { %p2412_p13 = pnand %p2411_p11, %p2405_p2 }
  0x39   : > { %2415 = shalt.err (!%p2412_p13)
}
  0x3a   : > { %s2541_s5 = smov 256   ;;  %s2542_s17 = smov 128  }
  0x3b   : > { %s2543_s9 = smov 8   ;;  %p245_p5 = scmp.lt.s32.totalorder %s2538_s28, 5 }
  0x3c   : > { %2210 = dma.hbm_to_vmem [thread:$0]  (!%p2685_p4), %s2692_s23, 4096, %s2681_s6, %s2695_s7, %s2541_s5, %s2542_s17, %s2543_s9  }
  0x3d   : > { %p3002_p3 = scmp.ge.s32.totalorder %s2538_s28, 1 }
  0x3f   : > { %p246_p9 = pnand %p3002_p3, %p245_p5 }
  0x40   : > { %s251_s13 = sand.u32 (!%p246_p9), 1, %s2514_s22  }
  0x41   : > { %249 = sbr.rel (%p246_p9) target bundleno = 822 (0x336), region = 40  ;;  %s1756_s14 = sshll.u32 (!%p246_p9), %s251_s13, 8 }
  0x42   : > { %s252_s29 = scalar_lea.sflag (!%p246_p9), [#allocation4], %s251_s13  ;;  %s2727_s11 = scalar_lea.vmem (!%p246_p9), [#allocation3], %s1756_s14 }
  0x48   : > { %2489 = dma.done.wait (%p2653_p7), %s252_s29, 4096  }
  0x49   : > { %2491 = vsyncadd (%p2653_p7), %s252_s29, 4294963200  ;;  %s289_s23 = sand.u32 1, %s2502_s19   ;;  %s1758_s6 = sshll.u32 %s2522_s24, 5 }
  0x4a   : > { %s1757_s8 = sshll.u32 %s289_s23, 7  ;;  %p295_p12 = scmp.lt.s32.totalorder %s1758_s6, 63 }
  0x4b   : > { %s1760_s7 = sshll.u32 %s2526_s25, 5  ;;  %s2748_s29 = scalar_lea.vmem [#allocation6], %s1757_s8 }
  0x4c   : > { %s3026_s6 = smov (!%p295_p12, %s1758_s6), 63  ;;  %p301_p2 = scmp.lt.s32.totalorder %s1760_s7, 63 }
  0x4d   : > { %s1759_s30 = sshll.u32 %s3026_s6, 2  ;;  %p1762_p7 = scmp.ne.s32.totalorder %s2522_s24, 0 }
  0x4e   : > { %s2741_s17 = scalar_lea.vmem %s2982_s1, %s1759_s30  ;;  %s3028_s7 = smov (!%p301_p2, %s1760_s7), 63  ;;  %v2544_v0 = vmov (!%p1762_p7), 0.0  }
  0x4f   : > { %s1761_s12 = sshll.u32 %s3028_s7, 3  ;;  %311 = sbr.rel (%p1762_p7) target bundleno = 95 (0x5f), region = 48  ;;  %312 = vst [vmem:[#allocation2] sm:$0xff] (!%p1762_p7), %v2544_v0  ;;  %313 = vst [vmem:[#allocation2 + $0x8] sm:$0xff] (!%p1762_p7), %v2544_v0 }
  0x50   : > { %s2746_s14 = scalar_lea.vmem %s2983_s2, %s1761_s12  ;;  %314 = vst [vmem:[#allocation2 + $0x10] sm:$0xff] (!%p1762_p7), %v2544_v0  ;;  %315 = vst [vmem:[#allocation2 + $0x18] sm:$0xff] (!%p1762_p7), %v2544_v0 }
  0x51   : > { %316 = vst [vmem:[#allocation2 + $0x20] sm:$0xff] (!%p1762_p7), %v2544_v0  ;;  %317 = vst [vmem:[#allocation2 + $0x28] sm:$0xff] (!%p1762_p7), %v2544_v0 }
  0x52   : > { %318 = vst [vmem:[#allocation2 + $0x30] sm:$0xff] (!%p1762_p7), %v2544_v0  ;;  %319 = vst [vmem:[#allocation2 + $0x38] sm:$0xff] (!%p1762_p7), %v2544_v0 }
  0x53   : > { %320 = vst [vmem:[#allocation2 + $0x40] sm:$0xff] (!%p1762_p7), %v2544_v0  ;;  %321 = vst [vmem:[#allocation2 + $0x48] sm:$0xff] (!%p1762_p7), %v2544_v0 }
  0x54   : > { %322 = vst [vmem:[#allocation2 + $0x50] sm:$0xff] (!%p1762_p7), %v2544_v0  ;;  %323 = vst [vmem:[#allocation2 + $0x58] sm:$0xff] (!%p1762_p7), %v2544_v0 }
  0x55   : > { %324 = vst [vmem:[#allocation2 + $0x60] sm:$0xff] (!%p1762_p7), %v2544_v0  ;;  %325 = vst [vmem:[#allocation2 + $0x68] sm:$0xff] (!%p1762_p7), %v2544_v0 }
  0x56   : > { %326 = vst [vmem:[#allocation2 + $0x70] sm:$0xff] %v2544_v0  ;;  %327 = vst [vmem:[#allocation2 + $0x78] sm:$0xff] %v2544_v0 }
  0x57   : > { %328 = vst [vmem:[#allocation2 + $0x80] sm:$0xff] %v2544_v0  ;;  %329 = vst [vmem:[#allocation2 + $0x88] sm:$0xff] %v2544_v0 }
  0x58   : > { %330 = vst [vmem:[#allocation2 + $0x90] sm:$0xff] %v2544_v0  ;;  %331 = vst [vmem:[#allocation2 + $0x98] sm:$0xff] %v2544_v0 }
  0x59   : > { %332 = vst [vmem:[#allocation2 + $0xa0] sm:$0xff] %v2544_v0  ;;  %333 = vst [vmem:[#allocation2 + $0xa8] sm:$0xff] %v2544_v0 }
  0x5a   : > { %334 = vst [vmem:[#allocation2 + $0xb0] sm:$0xff] %v2544_v0  ;;  %335 = vst [vmem:[#allocation2 + $0xb8] sm:$0xff] %v2544_v0 }
  0x5b   : > { %336 = vst [vmem:[#allocation2 + $0xc0] sm:$0xff] %v2544_v0  ;;  %337 = vst [vmem:[#allocation2 + $0xc8] sm:$0xff] %v2544_v0 }
  0x5c   : > { %338 = vst [vmem:[#allocation2 + $0xd0] sm:$0xff] %v2544_v0  ;;  %339 = vst [vmem:[#allocation2 + $0xd8] sm:$0xff] %v2544_v0 }
  0x5d   : > { %340 = vst [vmem:[#allocation2 + $0xe0] sm:$0xff] %v2544_v0  ;;  %341 = vst [vmem:[#allocation2 + $0xe8] sm:$0xff] %v2544_v0 }
  0x5e   : > { %342 = vst [vmem:[#allocation2 + $0xf0] sm:$0xff] %v2544_v0  ;;  %343 = vst [vmem:[#allocation2 + $0xf8] sm:$0xff] %v2544_v0 }
  0x5f PF: > { %v2312_v1 = vld [vmem:[%s2741_s17 + $0x40] sm:$0xff]   ;;  %v2314_v3 = vld [vmem:[%s2741_s17 + $0x48] sm:$0xff]   ;;  %v2316_v5 = vld [vmem:[%s2741_s17 + $0x50] sm:$0xff]   ;;  %p1811_p4 = scmp.ne.s32.totalorder %s2522_s24, 1 }
  0x60   : > { %v2313_v2 = vld [vmem:[%s2741_s17] sm:$0xff]   ;;  %1987 = vmatprep.subr.bf16.mxu0 %v2312_v1  ;;  %2171 = vmatprep.subr.bf16.mxu1 %v2312_v1  ;;  %v2315_v4 = vld [vmem:[%s2741_s17 + $0x8] sm:$0xff]   ;;  %v2317_v6 = vld [vmem:[%s2741_s17 + $0x10] sm:$0xff]  }
  0x61   : > { %1988 = vmatpush3.bf16.msra.mxu0 %v2313_v2  ;;  %2179 = vmatpush3.bf16.msra.mxu1 %v2313_v2  ;;  %v2318_v7 = vld [vmem:[%s2741_s17 + $0x58] sm:$0xff]   ;;  %v2320_v9 = vld [vmem:[%s2741_s17 + $0x60] sm:$0xff]   ;;  %v2322_v11 = vld [vmem:[%s2741_s17 + $0x68] sm:$0xff]  }
  0x62   : > { %1989 = vmatprep.subr.bf16.mxu0 %v2314_v3  ;;  %2172 = vmatprep.subr.bf16.mxu1 %v2314_v3  ;;  %v2319_v8 = vld [vmem:[%s2741_s17 + $0x18] sm:$0xff]   ;;  %v2321_v10 = vld [vmem:[%s2741_s17 + $0x20] sm:$0xff]   ;;  %v2323_v14 = vld [vmem:[%s2741_s17 + $0x28] sm:$0xff]  }
  0x63   : > { %v2330_v12 = vld [vmem:[%s2727_s11 + $0x4] ss:$8 sps:$4 sm:$0xff]   ;;  %v2324_v15 = vld [vmem:[%s2741_s17 + $0x70] sm:$0xff]   ;;  %v2326_v17 = vld [vmem:[%s2741_s17 + $0x78] sm:$0xff]  }
  0x64   : > { %v2333_v13 = vld [vmem:[%s2727_s11 + $0x84] ss:$8 sps:$4 sm:$0xff]   ;;  %728 = vmatprep.mubr.bf16.mxu0 %v2330_v12  ;;  %v2325_v16 = vld [vmem:[%s2741_s17 + $0x30] sm:$0xff]   ;;  %v2327_v18 = vld [vmem:[%s2741_s17 + $0x38] sm:$0xff]  }
  0x65   : > { %1990 = vmatpush3.bf16.msra.mxu0 %v2315_v4  ;;  %2180 = vmatpush3.bf16.msra.mxu1 %v2315_v4  ;;  %v2328_v19 = vld [vmem:[%s2727_s11] ss:$8 sps:$4 sm:$0xff]   ;;  %v2334_v21 = vld [vmem:[%s2727_s11 + $0x14] ss:$8 sps:$4 sm:$0xff]   ;;  %v2338_v23 = vld [vmem:[%s2727_s11 + $0x10] ss:$8 sps:$4 sm:$0xff]  }
  0x66   : > { %1991 = vmatprep.subr.bf16.mxu0 %v2316_v5  ;;  %2173 = vmatprep.subr.bf16.mxu1 %v2316_v5  ;;  %v2331_v20 = vld [vmem:[%s2727_s11 + $0x80] ss:$8 sps:$4 sm:$0xff]   ;;  %v2336_v22 = vld [vmem:[%s2727_s11 + $0x94] ss:$8 sps:$4 sm:$0xff]   ;;  %v2339_v24 = vld [vmem:[%s2727_s11 + $0x90] ss:$8 sps:$4 sm:$0xff]  }
  0x67   : > { %792 = vmatprep.mubr.bf16.mxu1 %v2333_v13  ;;  %v2340_v25 = vld [vmem:[%s2727_s11 + $0x24] ss:$8 sps:$4 sm:$0xff]   ;;  %v2344_v27 = vld [vmem:[%s2727_s11 + $0x20] ss:$8 sps:$4 sm:$0xff]   ;;  %v2346_v29 = vld [vmem:[%s2727_s11 + $0x34] ss:$8 sps:$4 sm:$0xff]  }
  0x68   : > { %v2342_v26 = vld [vmem:[%s2727_s11 + $0xa4] ss:$8 sps:$4 sm:$0xff]   ;;  %v2345_v28 = vld [vmem:[%s2727_s11 + $0xa0] ss:$8 sps:$4 sm:$0xff]   ;;  %v2348_v30 = vld [vmem:[%s2727_s11 + $0xb4] ss:$8 sps:$4 sm:$0xff]  }
  0x69   : > { %1992 = vmatpush3.bf16.msra.mxu0 %v2317_v6  ;;  %2181 = vmatpush3.bf16.msra.mxu1 %v2317_v6  ;;  %v2350_v31 = vld [vmem:[%s2727_s11 + $0x30] ss:$8 sps:$4 sm:$0xff]   ;;  %v2352_v33 = vld [vmem:[%s2727_s11 + $0x44] ss:$8 sps:$4 sm:$0xff]   ;;  %v2356_v35 = vld [vmem:[%s2727_s11 + $0x40] ss:$8 sps:$4 sm:$0xff]  }
  0x6a   : > { %1993 = vmatprep.subr.bf16.mxu0 %v2318_v7  ;;  %2174 = vmatprep.subr.bf16.mxu1 %v2318_v7  ;;  %v2351_v32 = vld [vmem:[%s2727_s11 + $0xb0] ss:$8 sps:$4 sm:$0xff]   ;;  %v2354_v34 = vld [vmem:[%s2727_s11 + $0xc4] ss:$8 sps:$4 sm:$0xff]   ;;  %v2357_v36 = vld [vmem:[%s2727_s11 + $0xc0] ss:$8 sps:$4 sm:$0xff]  }
  0x6b   : > { %v2358_v37 = vld [vmem:[%s2727_s11 + $0x54] ss:$8 sps:$4 sm:$0xff]   ;;  %v2362_v39 = vld [vmem:[%s2727_s11 + $0x50] ss:$8 sps:$4 sm:$0xff]   ;;  %v2364_v41 = vld [vmem:[%s2727_s11 + $0x64] ss:$8 sps:$4 sm:$0xff]  }
  0x6c   : > { %v2360_v38 = vld [vmem:[%s2727_s11 + $0xd4] ss:$8 sps:$4 sm:$0xff]   ;;  %v2363_v40 = vld [vmem:[%s2727_s11 + $0xd0] ss:$8 sps:$4 sm:$0xff]   ;;  %v2366_v42 = vld [vmem:[%s2727_s11 + $0xe4] ss:$8 sps:$4 sm:$0xff]  }
  0x6d   : > { %1994 = vmatpush3.bf16.msra.mxu0 %v2319_v8  ;;  %2182 = vmatpush3.bf16.msra.mxu1 %v2319_v8  ;;  %v2368_v43 = vld [vmem:[%s2727_s11 + $0x60] ss:$8 sps:$4 sm:$0xff]   ;;  %v2370_v45 = vld [vmem:[%s2727_s11 + $0x74] ss:$8 sps:$4 sm:$0xff]   ;;  %v2374_v47 = vld [vmem:[%s2727_s11 + $0x70] ss:$8 sps:$4 sm:$0xff]  }
  0x6e   : > { %1995 = vmatprep.subr.bf16.mxu0 %v2320_v9  ;;  %2175 = vmatprep.subr.bf16.mxu1 %v2320_v9  ;;  %v2369_v44 = vld [vmem:[%s2727_s11 + $0xe0] ss:$8 sps:$4 sm:$0xff]   ;;  %v2372_v46 = vld [vmem:[%s2727_s11 + $0xf4] ss:$8 sps:$4 sm:$0xff]   ;;  %v2375_v48 = vld [vmem:[%s2727_s11 + $0xf0] ss:$8 sps:$4 sm:$0xff]  }
  0x6f   : > { %v344_v51 = vld [vmem:[#allocation2] sm:$0xff]  ;;  %v345_v59 = vld [vmem:[#allocation2 + $0x8] sm:$0xff]  ;;  %v346_v7 = vld [vmem:[#allocation2 + $0x10] sm:$0xff] }
  0x70   : > { %v360_v53 = vld [vmem:[#allocation2 + $0x80] sm:$0xff]  ;;  %v361_v61 = vld [vmem:[#allocation2 + $0x88] sm:$0xff]  ;;  %v362_v9 = vld [vmem:[#allocation2 + $0x90] sm:$0xff] }
  0x71   : > { %1996 = vmatpush3.bf16.msra.mxu0 %v2321_v10  ;;  %2183 = vmatpush3.bf16.msra.mxu1 %v2321_v10 }
  0x72   : > { %1997 = vmatprep.subr.bf16.mxu0 %v2322_v11  ;;  %2176 = vmatprep.subr.bf16.mxu1 %v2322_v11 }
  0x75   : > { %1998 = vmatpush3.bf16.msra.mxu0 %v2323_v14  ;;  %2184 = vmatpush3.bf16.msra.mxu1 %v2323_v14 }
  0x76   : > { %1999 = vmatprep.subr.bf16.mxu0 %v2324_v15  ;;  %2177 = vmatprep.subr.bf16.mxu1 %v2324_v15  ;;  %v347_v15 = vld [vmem:[#allocation2 + $0x18] sm:$0xff] }
  0x79   : > { %2000 = vmatpush3.bf16.msra.mxu0 %v2325_v16  ;;  %2185 = vmatpush3.bf16.msra.mxu1 %v2325_v16 }
  0x7a   : > { %2001 = vmatprep.subr.bf16.mxu0 %v2326_v17  ;;  %2178 = vmatprep.subr.bf16.mxu1 %v2326_v17  ;;  %v363_v17 = vld [vmem:[#allocation2 + $0x98] sm:$0xff] }
  0x7d   : > { %2002 = vmatpush3.bf16.msra.mxu0 %v2327_v18  ;;  %2186 = vmatpush3.bf16.msra.mxu1 %v2327_v18 }
  0x80   : > { %729 = vmatmul.mubr.bf16.vlgmr.msra.gmra.mrb[0].mxu0 %v2328_v19  ;;  %793 = vmatmul.mubr.bf16.vlgmr.msra.gmra.mrb[0].mxu1 %v2331_v20 }
  0x81   : > { %736 = vmatprep.mubr.bf16.mxu0 %v2334_v21  ;;  %800 = vmatprep.mubr.bf16.mxu1 %v2336_v22 }
  0x88   : > { %737 = vmatmul.mubr.bf16.gmra.mrb[4].mxu0 %v2338_v23  ;;  %801 = vmatmul.mubr.bf16.gmra.mrb[4].mxu1 %v2339_v24 }
  0x89   : > { %744 = vmatprep.mubr.bf16.mxu0 %v2340_v25  ;;  %808 = vmatprep.mubr.bf16.mxu1 %v2342_v26 }
  0x90   : > { %745 = vmatmul.mubr.bf16.gmra.mrb[8].mxu0 %v2344_v27  ;;  %809 = vmatmul.mubr.bf16.gmra.mrb[8].mxu1 %v2345_v28  ;;  %v348_v27 = vld [vmem:[#allocation2 + $0x20] sm:$0xff] }
  0x91   : > { %752 = vmatprep.mubr.bf16.mxu0 %v2346_v29  ;;  %816 = vmatprep.mubr.bf16.mxu1 %v2348_v30  ;;  %v364_v29 = vld [vmem:[#allocation2 + $0xa0] sm:$0xff] }
  0x98   : > { %753 = vmatmul.mubr.bf16.gmra.mrb[12].mxu0 %v2350_v31  ;;  %817 = vmatmul.mubr.bf16.gmra.mrb[12].mxu1 %v2351_v32 }
  0x99   : > { %760 = vmatprep.mubr.bf16.mxu0 %v2352_v33  ;;  %824 = vmatprep.mubr.bf16.mxu1 %v2354_v34 }
  0xa0   : > { %761 = vmatmul.mubr.bf16.gmra.mrb[16].mxu0 %v2356_v35  ;;  %825 = vmatmul.mubr.bf16.gmra.mrb[16].mxu1 %v2357_v36  ;;  %v349_v35 = vld [vmem:[#allocation2 + $0x28] sm:$0xff] }
  0xa1   : > { %768 = vmatprep.mubr.bf16.mxu0 %v2358_v37  ;;  %832 = vmatprep.mubr.bf16.mxu1 %v2360_v38  ;;  %v365_v37 = vld [vmem:[#allocation2 + $0xa8] sm:$0xff] }
  0xa8   : > { %769 = vmatmul.mubr.bf16.gmra.mrb[20].mxu0 %v2362_v39  ;;  %833 = vmatmul.mubr.bf16.gmra.mrb[20].mxu1 %v2363_v40 }
  0xa9   : > { %776 = vmatprep.mubr.bf16.mxu0 %v2364_v41  ;;  %840 = vmatprep.mubr.bf16.mxu1 %v2366_v42 }
  0xb0   : > { %777 = vmatmul.mubr.bf16.gmra.mrb[24].mxu0 %v2368_v43  ;;  %841 = vmatmul.mubr.bf16.gmra.mrb[24].mxu1 %v2369_v44 }
  0xb1   : > { %784 = vmatprep.mubr.bf16.mxu0 %v2370_v45  ;;  %848 = vmatprep.mubr.bf16.mxu1 %v2372_v46 }
  0xb8   : > { %785 = vmatmul.mubr.bf16.gmra.mrb[28].mxu0 %v2374_v47  ;;  %849 = vmatmul.mubr.bf16.gmra.mrb[28].mxu1 %v2375_v48  ;;  %v350_v47 = vld [vmem:[#allocation2 + $0x30] sm:$0xff] }
 0x153   : > { %v2003_v49 = vpop.f32.mrb[0].mxu0  ;;  %v2051_v50 = vpop.f32.mrb[0].mxu1 }
 0x154   : > { %v2004_v52 = vpop.f32.mrb[1].mxu0  ;;  %v2052_v54 = vpop.f32.mrb[1].mxu1 }
 0x155   : > { %v2005_v55 = vadd.f32 %v2004_v52, %v2003_v49  ;;  %v2053_v56 = vadd.f32 %v2052_v54, %v2051_v50  ;;  %v2006_v57 = vpop.f32.mrb[2].mxu0  ;;  %v2054_v58 = vpop.f32.mrb[2].mxu1  ;;  %v366_v49 = vld [vmem:[#allocation2 + $0xb0] sm:$0xff] }
 0x156   : > { %v2007_v60 = vpop.f32.mrb[3].mxu0  ;;  %v2055_v62 = vpop.f32.mrb[3].mxu1 }
 0x157   : > { %v857_v63 = vadd.f32 %v2005_v55, %v344_v51  ;;  %v873_v0 = vadd.f32 %v2053_v56, %v360_v53  ;;  %v2008_v1 = vadd.f32 %v2007_v60, %v2006_v57  ;;  %v2056_v2 = vadd.f32 %v2055_v62, %v2054_v58  ;;  %v351_v55 = vld [vmem:[#allocation2 + $0x38] sm:$0xff] }
 0x158   : > { %v367_v57 = vld [vmem:[#allocation2 + $0xb8] sm:$0xff] }
 0x159   : > { %889 = vst [vmem:[#allocation2] sm:$0xff] %v857_v63  ;;  %905 = vst [vmem:[#allocation2 + $0x80] sm:$0xff] %v873_v0  ;;  %v858_v3 = vadd.f32 %v2008_v1, %v345_v59  ;;  %v874_v4 = vadd.f32 %v2056_v2, %v361_v61 }
 0x15b   : > { %890 = vst [vmem:[#allocation2 + $0x8] sm:$0xff] %v858_v3  ;;  %906 = vst [vmem:[#allocation2 + $0x88] sm:$0xff] %v874_v4  ;;  %v2009_v5 = vpop.f32.mrb[4].mxu0  ;;  %v2057_v6 = vpop.f32.mrb[4].mxu1  ;;  %v352_v3 = vld [vmem:[#allocation2 + $0x40] sm:$0xff] }
 0x15c   : > { %v2010_v8 = vpop.f32.mrb[5].mxu0  ;;  %v2058_v10 = vpop.f32.mrb[5].mxu1 }
 0x15d   : > { %v2011_v11 = vadd.f32 %v2010_v8, %v2009_v5  ;;  %v2059_v12 = vadd.f32 %v2058_v10, %v2057_v6  ;;  %v2012_v13 = vpop.f32.mrb[6].mxu0  ;;  %v2060_v14 = vpop.f32.mrb[6].mxu1  ;;  %v368_v5 = vld [vmem:[#allocation2 + $0xc0] sm:$0xff] }
 0x15e   : > { %v2013_v16 = vpop.f32.mrb[7].mxu0  ;;  %v2061_v18 = vpop.f32.mrb[7].mxu1 }
 0x15f   : > { %v859_v19 = vadd.f32 %v2011_v11, %v346_v7  ;;  %v875_v20 = vadd.f32 %v2059_v12, %v362_v9  ;;  %v2014_v21 = vadd.f32 %v2013_v16, %v2012_v13  ;;  %v2062_v22 = vadd.f32 %v2061_v18, %v2060_v14  ;;  %v353_v11 = vld [vmem:[#allocation2 + $0x48] sm:$0xff] }
 0x160   : > { %v369_v13 = vld [vmem:[#allocation2 + $0xc8] sm:$0xff] }
 0x161   : > { %891 = vst [vmem:[#allocation2 + $0x10] sm:$0xff] %v859_v19  ;;  %907 = vst [vmem:[#allocation2 + $0x90] sm:$0xff] %v875_v20  ;;  %v860_v23 = vadd.f32 %v2014_v21, %v347_v15  ;;  %v876_v24 = vadd.f32 %v2062_v22, %v363_v17 }
 0x163   : > { %892 = vst [vmem:[#allocation2 + $0x18] sm:$0xff] %v860_v23  ;;  %908 = vst [vmem:[#allocation2 + $0x98] sm:$0xff] %v876_v24  ;;  %v2015_v25 = vpop.f32.mrb[8].mxu0  ;;  %v2063_v26 = vpop.f32.mrb[8].mxu1  ;;  %v354_v23 = vld [vmem:[#allocation2 + $0x50] sm:$0xff] }
 0x164   : > { %v2016_v28 = vpop.f32.mrb[9].mxu0  ;;  %v2064_v30 = vpop.f32.mrb[9].mxu1 }
 0x165   : > { %v2017_v31 = vadd.f32 %v2016_v28, %v2015_v25  ;;  %v2065_v32 = vadd.f32 %v2064_v30, %v2063_v26  ;;  %v2018_v33 = vpop.f32.mrb[10].mxu0  ;;  %v2066_v34 = vpop.f32.mrb[10].mxu1  ;;  %v370_v25 = vld [vmem:[#allocation2 + $0xd0] sm:$0xff] }
 0x166   : > { %v2019_v36 = vpop.f32.mrb[11].mxu0  ;;  %v2067_v38 = vpop.f32.mrb[11].mxu1 }
 0x167   : > { %v861_v39 = vadd.f32 %v2017_v31, %v348_v27  ;;  %v877_v40 = vadd.f32 %v2065_v32, %v364_v29  ;;  %v2020_v41 = vadd.f32 %v2019_v36, %v2018_v33  ;;  %v2068_v42 = vadd.f32 %v2067_v38, %v2066_v34  ;;  %v355_v31 = vld [vmem:[#allocation2 + $0x58] sm:$0xff] }
 0x168   : > { %v371_v33 = vld [vmem:[#allocation2 + $0xd8] sm:$0xff] }
 0x169   : > { %893 = vst [vmem:[#allocation2 + $0x20] sm:$0xff] %v861_v39  ;;  %909 = vst [vmem:[#allocation2 + $0xa0] sm:$0xff] %v877_v40  ;;  %v862_v43 = vadd.f32 %v2020_v41, %v349_v35  ;;  %v878_v44 = vadd.f32 %v2068_v42, %v365_v37 }
 0x16b   : > { %894 = vst [vmem:[#allocation2 + $0x28] sm:$0xff] %v862_v43  ;;  %910 = vst [vmem:[#allocation2 + $0xa8] sm:$0xff] %v878_v44  ;;  %v2021_v45 = vpop.f32.mrb[12].mxu0  ;;  %v2069_v46 = vpop.f32.mrb[12].mxu1  ;;  %v356_v43 = vld [vmem:[#allocation2 + $0x60] sm:$0xff] }
 0x16c   : > { %v2022_v48 = vpop.f32.mrb[13].mxu0  ;;  %v2070_v50 = vpop.f32.mrb[13].mxu1 }
 0x16d   : > { %v2023_v51 = vadd.f32 %v2022_v48, %v2021_v45  ;;  %v2071_v52 = vadd.f32 %v2070_v50, %v2069_v46  ;;  %v2024_v53 = vpop.f32.mrb[14].mxu0  ;;  %v2072_v54 = vpop.f32.mrb[14].mxu1  ;;  %v372_v45 = vld [vmem:[#allocation2 + $0xe0] sm:$0xff] }
 0x16e   : > { %v2025_v56 = vpop.f32.mrb[15].mxu0  ;;  %v2073_v58 = vpop.f32.mrb[15].mxu1 }
 0x16f   : > { %v863_v59 = vadd.f32 %v2023_v51, %v350_v47  ;;  %v879_v60 = vadd.f32 %v2071_v52, %v366_v49  ;;  %v2026_v61 = vadd.f32 %v2025_v56, %v2024_v53  ;;  %v2074_v62 = vadd.f32 %v2073_v58, %v2072_v54  ;;  %v357_v51 = vld [vmem:[#allocation2 + $0x68] sm:$0xff] }
 0x170   : > { %v373_v53 = vld [vmem:[#allocation2 + $0xe8] sm:$0xff] }
 0x171   : > { %895 = vst [vmem:[#allocation2 + $0x30] sm:$0xff] %v863_v59  ;;  %911 = vst [vmem:[#allocation2 + $0xb0] sm:$0xff] %v879_v60  ;;  %v864_v63 = vadd.f32 %v2026_v61, %v351_v55  ;;  %v880_v0 = vadd.f32 %v2074_v62, %v367_v57 }
 0x173   : > { %896 = vst [vmem:[#allocation2 + $0x38] sm:$0xff] %v864_v63  ;;  %912 = vst [vmem:[#allocation2 + $0xb8] sm:$0xff] %v880_v0  ;;  %v2027_v1 = vpop.f32.mrb[16].mxu0  ;;  %v2075_v2 = vpop.f32.mrb[16].mxu1  ;;  %v358_v63 = vld [vmem:[#allocation2 + $0x70] sm:$0xff] }
 0x174   : > { %v2028_v4 = vpop.f32.mrb[17].mxu0  ;;  %v2076_v6 = vpop.f32.mrb[17].mxu1 }
 0x175   : > { %v2029_v7 = vadd.f32 %v2028_v4, %v2027_v1  ;;  %v2077_v8 = vadd.f32 %v2076_v6, %v2075_v2  ;;  %v2030_v9 = vpop.f32.mrb[18].mxu0  ;;  %v2078_v10 = vpop.f32.mrb[18].mxu1  ;;  %v374_v1 = vld [vmem:[#allocation2 + $0xf0] sm:$0xff] }
 0x176   : > { %v2031_v12 = vpop.f32.mrb[19].mxu0  ;;  %v2079_v14 = vpop.f32.mrb[19].mxu1 }
 0x177   : > { %v865_v15 = vadd.f32 %v2029_v7, %v352_v3  ;;  %v881_v16 = vadd.f32 %v2077_v8, %v368_v5  ;;  %v2032_v17 = vadd.f32 %v2031_v12, %v2030_v9  ;;  %v2080_v18 = vadd.f32 %v2079_v14, %v2078_v10  ;;  %v359_v7 = vld [vmem:[#allocation2 + $0x78] sm:$0xff] }
 0x178   : > { %v375_v9 = vld [vmem:[#allocation2 + $0xf8] sm:$0xff] }
 0x179   : > { %897 = vst [vmem:[#allocation2 + $0x40] sm:$0xff] %v865_v15  ;;  %913 = vst [vmem:[#allocation2 + $0xc0] sm:$0xff] %v881_v16  ;;  %v866_v19 = vadd.f32 %v2032_v17, %v353_v11  ;;  %v882_v20 = vadd.f32 %v2080_v18, %v369_v13  ;;  %v973_v17 = vld [vmem:[%s2746_s14 + $0x80] sm:$0xff] (!%p1811_p4) }
 0x17a   : > { %v957_v18 = vld [vmem:[%s2746_s14] sm:$0xff] (!%p1811_p4) }
 0x17b   : > { %898 = vst [vmem:[#allocation2 + $0x48] sm:$0xff] %v866_v19  ;;  %914 = vst [vmem:[#allocation2 + $0xc8] sm:$0xff] %v882_v20  ;;  %v2033_v21 = vpop.f32.mrb[20].mxu0  ;;  %v2081_v22 = vpop.f32.mrb[20].mxu1  ;;  %v2545_v19 = vmov (!%p1811_p4), 0   ;;  %v974_v20 = vld [vmem:[%s2746_s14 + $0x88] sm:$0xff] (!%p1811_p4) }
 0x17c   : > { %v2034_v24 = vpop.f32.mrb[21].mxu0  ;;  %v2082_v26 = vpop.f32.mrb[21].mxu1  ;;  %2377 = vset.pattern.permute.xlu1 (!%p1811_p4), %v2545_v19  ;;  %2376 = vset.pattern.permute.xlu0 (!%p1811_p4), %v2545_v19 }
 0x17d   : > { %v2035_v27 = vadd.f32 %v2034_v24, %v2033_v21  ;;  %v2083_v28 = vadd.f32 %v2082_v26, %v2081_v22  ;;  %v2036_v29 = vpop.f32.mrb[22].mxu0  ;;  %v2084_v30 = vpop.f32.mrb[22].mxu1  ;;  %1071 = vperm.xlu1 (!%p1811_p4), %2377, %v973_v17   ;;  %991 = vperm.xlu0 (!%p1811_p4), %2376, %v957_v18   ;;  %v958_v21 = vld [vmem:[%s2746_s14 + $0x8] sm:$0xff] (!%p1811_p4)  ;;  %v960_v22 = vld [vmem:[%s2746_s14 + $0x18] sm:$0xff] (!%p1811_p4)  ;;  %v2378_v26 = vld [vmem:[%s2984_s3] sm:$0xff] (!%p1811_p4)  }
 0x17e   : > { %v2037_v32 = vpop.f32.mrb[23].mxu0  ;;  %v2085_v34 = vpop.f32.mrb[23].mxu1  ;;  %v976_v24 = vld [vmem:[%s2746_s14 + $0x98] sm:$0xff] (!%p1811_p4)  ;;  %2123 = vmatprep.subr.bf16.mxu0 (!%p1811_p4), %v2378_v26  ;;  %2187 = vmatprep.subr.bf16.mxu1 (!%p1811_p4), %v2378_v26 }
 0x17f   : > { %v867_v35 = vadd.f32 %v2035_v27, %v354_v23  ;;  %v883_v36 = vadd.f32 %v2083_v28, %v370_v25  ;;  %v2038_v37 = vadd.f32 %v2037_v32, %v2036_v29  ;;  %v2086_v38 = vadd.f32 %v2085_v34, %v2084_v30  ;;  %v959_v23 = vld [vmem:[%s2746_s14 + $0x10] sm:$0xff] (!%p1811_p4)  ;;  %v2379_v27 = vld [vmem:[%s2984_s3 + $0x8] sm:$0xff] (!%p1811_p4)   ;;  %v961_v29 = vld [vmem:[%s2746_s14 + $0x20] sm:$0xff] (!%p1811_p4)  ;;  %2124 = vmatpush3.bf16.msra.mxu0 (!%p1811_p4), %v2378_v26 }
 0x180   : > { %v975_v25 = vld [vmem:[%s2746_s14 + $0x90] sm:$0xff] (!%p1811_p4)  ;;  %v962_v28 = vld [vmem:[%s2746_s14 + $0x28] sm:$0xff] (!%p1811_p4)  ;;  %2195 = vmatpush3.bf16.msra.mxu1 (!%p1811_p4), %v2378_v26  ;;  %2125 = vmatprep.subr.bf16.mxu0 (!%p1811_p4), %v2379_v27  ;;  %v977_v32 = vld [vmem:[%s2746_s14 + $0xa0] sm:$0xff] (!%p1811_p4) }
 0x181   : > { %899 = vst [vmem:[#allocation2 + $0x50] sm:$0xff] %v867_v35  ;;  %915 = vst [vmem:[#allocation2 + $0xd0] sm:$0xff] %v883_v36  ;;  %v868_v39 = vadd.f32 %v2038_v37, %v355_v31  ;;  %v884_v40 = vadd.f32 %v2086_v38, %v371_v33  ;;  %1076 = vperm.xlu1 (!%p1811_p4), %2377, %v974_v20   ;;  %996 = vperm.xlu0 (!%p1811_p4), %2376, %v958_v21   ;;  %v2380_v30 = vld [vmem:[%s2984_s3 + $0x10] sm:$0xff] (!%p1811_p4)   ;;  %v978_v31 = vld [vmem:[%s2746_s14 + $0xa8] sm:$0xff] (!%p1811_p4) }
 0x182   : > { %2188 = vmatprep.subr.bf16.mxu1 (!%p1811_p4), %v2379_v27  ;;  %v2381_v33 = vld [vmem:[%s2984_s3 + $0x18] sm:$0xff] (!%p1811_p4)   ;;  %v963_v35 = vld [vmem:[%s2746_s14 + $0x30] sm:$0xff] (!%p1811_p4)  ;;  %v2382_v36 = vld [vmem:[%s2984_s3 + $0x20] sm:$0xff] (!%p1811_p4)  }
 0x183   : > { %900 = vst [vmem:[#allocation2 + $0x58] sm:$0xff] %v868_v39  ;;  %916 = vst [vmem:[#allocation2 + $0xd8] sm:$0xff] %v884_v40  ;;  %v2039_v41 = vpop.f32.mrb[24].mxu0  ;;  %v2087_v42 = vpop.f32.mrb[24].mxu1  ;;  %2126 = vmatpush3.bf16.msra.mxu0 (!%p1811_p4), %v2379_v27  ;;  %v964_v34 = vld [vmem:[%s2746_s14 + $0x38] sm:$0xff] (!%p1811_p4)  ;;  %v979_v38 = vld [vmem:[%s2746_s14 + $0xb0] sm:$0xff] (!%p1811_p4) }
 0x184   : > { %v2040_v44 = vpop.f32.mrb[25].mxu0  ;;  %v2088_v46 = vpop.f32.mrb[25].mxu1  ;;  %2196 = vmatpush3.bf16.msra.mxu1 (!%p1811_p4), %v2379_v27  ;;  %2127 = vmatprep.subr.bf16.mxu0 (!%p1811_p4), %v2380_v30  ;;  %v980_v37 = vld [vmem:[%s2746_s14 + $0xb8] sm:$0xff] (!%p1811_p4)  ;;  %v2383_v39 = vld [vmem:[%s2984_s3 + $0x28] sm:$0xff] (!%p1811_p4)  }
 0x185   : > { %v2041_v47 = vadd.f32 %v2040_v44, %v2039_v41  ;;  %v2089_v48 = vadd.f32 %v2088_v46, %v2087_v42  ;;  %v2042_v49 = vpop.f32.mrb[26].mxu0  ;;  %v2090_v50 = vpop.f32.mrb[26].mxu1  ;;  %1006 = vperm.xlu1 (!%p1811_p4), %2377, %v960_v22   ;;  %1001 = vperm.xlu0 (!%p1811_p4), %2376, %v959_v23   ;;  %v966_v40 = vld [vmem:[%s2746_s14 + $0x48] sm:$0xff] (!%p1811_p4)  ;;  %v965_v41 = vld [vmem:[%s2746_s14 + $0x40] sm:$0xff] (!%p1811_p4)  ;;  %v2384_v42 = vld [vmem:[%s2984_s3 + $0x30] sm:$0xff] (!%p1811_p4)  }
 0x186   : > { %v2043_v52 = vpop.f32.mrb[27].mxu0  ;;  %v2091_v54 = vpop.f32.mrb[27].mxu1  ;;  %2189 = vmatprep.subr.bf16.mxu1 (!%p1811_p4), %v2380_v30  ;;  %v981_v44 = vld [vmem:[%s2746_s14 + $0xc0] sm:$0xff] (!%p1811_p4)  ;;  %v968_v46 = vld [vmem:[%s2746_s14 + $0x58] sm:$0xff] (!%p1811_p4)  ;;  %v930_v21 = vld [vmem:[#allocation2 + $0x28] sm:$0xff] (!%p1811_p4) }
 0x187   : > { %v869_v55 = vadd.f32 %v2041_v47, %v356_v43  ;;  %v885_v56 = vadd.f32 %v2089_v48, %v372_v45  ;;  %v2044_v57 = vadd.f32 %v2043_v52, %v2042_v49  ;;  %v2092_v58 = vadd.f32 %v2091_v54, %v2090_v50  ;;  %2128 = vmatpush3.bf16.msra.mxu0 (!%p1811_p4), %v2380_v30  ;;  %v982_v43 = vld [vmem:[%s2746_s14 + $0xc8] sm:$0xff] (!%p1811_p4)  ;;  %v2385_v45 = vld [vmem:[%s2984_s3 + $0x38] sm:$0xff] (!%p1811_p4)   ;;  %v967_v47 = vld [vmem:[%s2746_s14 + $0x50] sm:$0xff] (!%p1811_p4) }
 0x188   : > { %2197 = vmatpush3.bf16.msra.mxu1 (!%p1811_p4), %v2380_v30  ;;  %2129 = vmatprep.subr.bf16.mxu0 (!%p1811_p4), %v2381_v33  ;;  %v984_v48 = vld [vmem:[%s2746_s14 + $0xd8] sm:$0xff] (!%p1811_p4)  ;;  %v983_v49 = vld [vmem:[%s2746_s14 + $0xd0] sm:$0xff] (!%p1811_p4)  ;;  %v970_v50 = vld [vmem:[%s2746_s14 + $0x68] sm:$0xff] (!%p1811_p4) }
 0x189   : > { %901 = vst [vmem:[#allocation2 + $0x60] sm:$0xff] %v869_v55  ;;  %917 = vst [vmem:[#allocation2 + $0xe0] sm:$0xff] %v885_v56  ;;  %v870_v59 = vadd.f32 %v2044_v57, %v357_v51  ;;  %v886_v60 = vadd.f32 %v2092_v58, %v373_v53  ;;  %1086 = vperm.xlu1 (!%p1811_p4), %2377, %v976_v24   ;;  %1081 = vperm.xlu0 (!%p1811_p4), %2376, %v975_v25   ;;  %v969_v51 = vld [vmem:[%s2746_s14 + $0x60] sm:$0xff] (!%p1811_p4)  ;;  %v986_v52 = vld [vmem:[%s2746_s14 + $0xe8] sm:$0xff] (!%p1811_p4) }
 0x18a   : > { %2190 = vmatprep.subr.bf16.mxu1 (!%p1811_p4), %v2381_v33  ;;  %v985_v53 = vld [vmem:[%s2746_s14 + $0xe0] sm:$0xff] (!%p1811_p4)  ;;  %v972_v54 = vld [vmem:[%s2746_s14 + $0x78] sm:$0xff] (!%p1811_p4)  ;;  %v971_v55 = vld [vmem:[%s2746_s14 + $0x70] sm:$0xff] (!%p1811_p4) }
 0x18b   : > { %902 = vst [vmem:[#allocation2 + $0x68] sm:$0xff] %v870_v59  ;;  %918 = vst [vmem:[#allocation2 + $0xe8] sm:$0xff] %v886_v60  ;;  %v2045_v61 = vpop.f32.mrb[28].mxu0  ;;  %v2093_v62 = vpop.f32.mrb[28].mxu1  ;;  %2130 = vmatpush3.bf16.msra.mxu0 (!%p1811_p4), %v2381_v33  ;;  %v988_v56 = vld [vmem:[%s2746_s14 + $0xf8] sm:$0xff] (!%p1811_p4)  ;;  %v987_v57 = vld [vmem:[%s2746_s14 + $0xf0] sm:$0xff] (!%p1811_p4) }
 0x18c   : > { %v2046_v0 = vpop.f32.mrb[29].mxu0  ;;  %v2094_v2 = vpop.f32.mrb[29].mxu1  ;;  %2198 = vmatpush3.bf16.msra.mxu1 (!%p1811_p4), %v2381_v33  ;;  %2131 = vmatprep.subr.bf16.mxu0 (!%p1811_p4), %v2382_v36  ;;  %v941_v60 = vld [vmem:[#allocation2 + $0x80] sm:$0xff] (!%p1811_p4) }
 0x18d   : > { %v2047_v3 = vadd.f32 %v2046_v0, %v2045_v61  ;;  %v2095_v4 = vadd.f32 %v2094_v2, %v2093_v62  ;;  %v2048_v5 = vpop.f32.mrb[30].mxu0  ;;  %v2096_v6 = vpop.f32.mrb[30].mxu1  ;;  %924 = sbr.rel (%p1811_p4) target bundleno = 795 (0x31b), region = 52  ;;  %1016 = vperm.xlu1 (!%p1811_p4), %2377, %v962_v28   ;;  %1011 = vperm.xlu0 (!%p1811_p4), %2376, %v961_v29   ;;  %v925_v61 = vld [vmem:[#allocation2] sm:$0xff] (!%p1811_p4)  ;;  %v942_v62 = vld [vmem:[#allocation2 + $0x88] sm:$0xff] (!%p1811_p4) }
 0x18e   : > { %v2049_v8 = vpop.f32.mrb[31].mxu0  ;;  %v2097_v10 = vpop.f32.mrb[31].mxu1  ;;  %2191 = vmatprep.subr.bf16.mxu1 (!%p1811_p4), %v2382_v36  ;;  %v929_v22 = vld [vmem:[#allocation2 + $0x20] sm:$0xff] (!%p1811_p4)  ;;  %v946_v28 = vld [vmem:[#allocation2 + $0xa8] sm:$0xff] (!%p1811_p4) }
 0x18f   : > { %v871_v11 = vadd.f32 %v2047_v3, %v358_v63  ;;  %v887_v12 = vadd.f32 %v2095_v4, %v374_v1  ;;  %v2050_v13 = vadd.f32 %v2049_v8, %v2048_v5  ;;  %v2098_v14 = vadd.f32 %v2097_v10, %v2096_v6  ;;  %2132 = vmatpush3.bf16.msra.mxu0 (!%p1811_p4), %v2382_v36  ;;  %v926_v63 = vld [vmem:[#allocation2 + $0x8] sm:$0xff] (!%p1811_p4)  ;;  %v928_v6 = vld [vmem:[#allocation2 + $0x18] sm:$0xff] (!%p1811_p4)  ;;  %v945_v29 = vld [vmem:[#allocation2 + $0xa0] sm:$0xff] (!%p1811_p4) }
 0x190   : > { %2199 = vmatpush3.bf16.msra.mxu1 (!%p1811_p4), %v2382_v36  ;;  %2133 = vmatprep.subr.bf16.mxu0 (!%p1811_p4), %v2383_v39  ;;  %v931_v36 = vld [vmem:[#allocation2 + $0x30] sm:$0xff] (!%p1811_p4) }
 0x191   : > { %903 = vst [vmem:[#allocation2 + $0x70] sm:$0xff] %v871_v11  ;;  %919 = vst [vmem:[#allocation2 + $0xf0] sm:$0xff] %v887_v12  ;;  %v872_v15 = vadd.f32 %v2050_v13, %v359_v7  ;;  %v888_v16 = vadd.f32 %v2098_v14, %v375_v9  ;;  %1096 = vperm.xlu1 (!%p1811_p4), %2377, %v978_v31   ;;  %1091 = vperm.xlu0 (!%p1811_p4), %2376, %v977_v32   ;;  %v927_v7 = vld [vmem:[#allocation2 + $0x10] sm:$0xff] (!%p1811_p4)  ;;  %v944_v14 = vld [vmem:[#allocation2 + $0x98] sm:$0xff] (!%p1811_p4) }
 0x192   : > { %2192 = vmatprep.subr.bf16.mxu1 (!%p1811_p4), %v2383_v39 }
 0x193   : > { %904 = vst [vmem:[#allocation2 + $0x78] sm:$0xff] %v872_v15  ;;  %920 = vst [vmem:[#allocation2 + $0xf8] sm:$0xff] %v888_v16  ;;  %2134 = vmatpush3.bf16.msra.mxu0 (!%p1811_p4), %v2383_v39  ;;  %v943_v15 = vld [vmem:[#allocation2 + $0x90] sm:$0xff] (!%p1811_p4) }
 0x194   : > { %2200 = vmatpush3.bf16.msra.mxu1 %v2383_v39  ;;  %2135 = vmatprep.subr.bf16.mxu0 %v2384_v42 }
 0x195   : > { %1026 = vperm.xlu1 %2377, %v964_v34   ;;  %1021 = vperm.xlu0 %2376, %v963_v35   ;;  %v932_v35 = vld [vmem:[#allocation2 + $0x38] sm:$0xff] }
 0x196   : > { %2193 = vmatprep.subr.bf16.mxu1 %v2384_v42 }
 0x197   : > { %2136 = vmatpush3.bf16.msra.mxu0 %v2384_v42 }
 0x198   : > { %2201 = vmatpush3.bf16.msra.mxu1 %v2384_v42  ;;  %2137 = vmatprep.subr.bf16.mxu0 %v2385_v45  ;;  %v948_v42 = vld [vmem:[#allocation2 + $0xb8] sm:$0xff] }
 0x199   : > { %1106 = vperm.xlu1 %2377, %v980_v37   ;;  %1101 = vperm.xlu0 %2376, %v979_v38  }
 0x19a   : > { %2194 = vmatprep.subr.bf16.mxu1 %v2385_v45 }
 0x19b   : > { %2138 = vmatpush3.bf16.msra.mxu0 %v2385_v45 }
 0x19c   : > { %2202 = vmatpush3.bf16.msra.mxu1 %v2385_v45 }
 0x19d   : > { %1036 = vperm.xlu1 %2377, %v966_v40   ;;  %1031 = vperm.xlu0 %2376, %v965_v41  }
 0x1a1   : > { %1116 = vperm.xlu1 %2377, %v982_v43   ;;  %1111 = vperm.xlu0 %2376, %v981_v44   ;;  %v947_v43 = vld [vmem:[#allocation2 + $0xb0] sm:$0xff] }
 0x1a5   : > { %1046 = vperm.xlu1 %2377, %v968_v46   ;;  %1041 = vperm.xlu0 %2376, %v967_v47  }
 0x1a9   : > { %1126 = vperm.xlu1 %2377, %v984_v48   ;;  %1121 = vperm.xlu0 %2376, %v983_v49   ;;  %v934_v49 = vld [vmem:[#allocation2 + $0x48] sm:$0xff] }
 0x1ad   : > { %1056 = vperm.xlu1 %2377, %v970_v50   ;;  %1051 = vperm.xlu0 %2376, %v969_v51   ;;  %v933_v50 = vld [vmem:[#allocation2 + $0x40] sm:$0xff] }
 0x1b1   : > { %1136 = vperm.xlu1 %2377, %v986_v52   ;;  %1131 = vperm.xlu0 %2376, %v985_v53  }
 0x1b5   : > { %1066 = vperm.xlu1 %2377, %v972_v54   ;;  %1061 = vperm.xlu0 %2376, %v971_v55  }
 0x1b9   : > { %1146 = vperm.xlu1 %2377, %v988_v56   ;;  %1141 = vperm.xlu0 %2376, %v987_v57   ;;  %v950_v56 = vld [vmem:[#allocation2 + $0xc8] sm:$0xff]  ;;  %v949_v57 = vld [vmem:[#allocation2 + $0xc0] sm:$0xff] }
 0x1fc   : > { %v1072_v58 = vpop.permute.xlu1 %1071  ;;  %v992_v59 = vpop.permute.xlu0 %991 }
 0x1fd   : > { %v1165_v2 = vmul.f32 %v1072_v58, %v941_v60  ;;  %v1149_v3 = vmul.f32 %v992_v59, %v925_v61 }
 0x200   : > { %v1077_v0 = vpop.permute.xlu1 %1076  ;;  %v997_v1 = vpop.permute.xlu0 %996 }
 0x201   : > { %v1166_v4 = vmul.f32 %v1077_v0, %v942_v62  ;;  %v1150_v5 = vmul.f32 %v997_v1, %v926_v63  ;;  %v936_v63 = vld [vmem:[#allocation2 + $0x58] sm:$0xff]  ;;  %v935_v0 = vld [vmem:[#allocation2 + $0x50] sm:$0xff] }
 0x203   : > { %v1181_v8 = vpack.c.bf16 %v1150_v5, %v1149_v3  ;;  %v1189_v9 = vpack.c.bf16 %v1166_v4, %v1165_v2 }
 0x204   : > { %v1007_v10 = vpop.permute.xlu1 %1006  ;;  %v1002_v11 = vpop.permute.xlu0 %1001 }
 0x205   : > { %v1152_v12 = vmul.f32 %v1007_v10, %v928_v6  ;;  %v1151_v13 = vmul.f32 %v1002_v11, %v927_v7  ;;  %2139 = vmatprep.mubr.bf16.mxu0 %v1181_v8  ;;  %2155 = vmatprep.mubr.bf16.mxu1 %v1189_v9  ;;  %v952_v6 = vld [vmem:[#allocation2 + $0xd8] sm:$0xff]  ;;  %v951_v7 = vld [vmem:[#allocation2 + $0xd0] sm:$0xff] }
 0x207   : > { %v1182_v16 = vpack.c.bf16 %v1152_v12, %v1151_v13  ;;  %v938_v13 = vld [vmem:[#allocation2 + $0x68] sm:$0xff] }
 0x208   : > { %v1087_v17 = vpop.permute.xlu1 %1086  ;;  %v1082_v18 = vpop.permute.xlu0 %1081 }
 0x209   : > { %v1168_v19 = vmul.f32 %v1087_v17, %v944_v14  ;;  %v1167_v20 = vmul.f32 %v1082_v18, %v943_v15  ;;  %2140 = vmatmul.mubr.bf16.vlgmr.msra.gmra.mrb[0].mxu0 %v1182_v16  ;;  %v937_v14 = vld [vmem:[#allocation2 + $0x60] sm:$0xff] }
 0x20b   : > { %v1190_v23 = vpack.c.bf16 %v1168_v19, %v1167_v20  ;;  %v954_v20 = vld [vmem:[#allocation2 + $0xe8] sm:$0xff] }
 0x20c   : > { %v1017_v24 = vpop.permute.xlu1 %1016  ;;  %v1012_v25 = vpop.permute.xlu0 %1011 }
 0x20d   : > { %v1154_v26 = vmul.f32 %v1017_v24, %v930_v21  ;;  %v1153_v27 = vmul.f32 %v1012_v25, %v929_v22  ;;  %2156 = vmatmul.mubr.bf16.vlgmr.msra.gmra.mrb[0].mxu1 %v1190_v23  ;;  %v953_v21 = vld [vmem:[#allocation2 + $0xe0] sm:$0xff] }
 0x20f   : > { %v1183_v30 = vpack.c.bf16 %v1154_v26, %v1153_v27  ;;  %v940_v27 = vld [vmem:[#allocation2 + $0x78] sm:$0xff] }
 0x210   : > { %v1097_v31 = vpop.permute.xlu1 %1096  ;;  %v1092_v32 = vpop.permute.xlu0 %1091 }
 0x211   : > { %v1170_v33 = vmul.f32 %v1097_v31, %v946_v28  ;;  %v1169_v34 = vmul.f32 %v1092_v32, %v945_v29  ;;  %2143 = vmatprep.mubr.bf16.mxu0 %v1183_v30  ;;  %v939_v28 = vld [vmem:[#allocation2 + $0x70] sm:$0xff] }
 0x213   : > { %v1191_v37 = vpack.c.bf16 %v1170_v33, %v1169_v34  ;;  %v956_v34 = vld [vmem:[#allocation2 + $0xf8] sm:$0xff] }
 0x214   : > { %v1027_v38 = vpop.permute.xlu1 %1026  ;;  %v1022_v39 = vpop.permute.xlu0 %1021 }
 0x215   : > { %v1156_v40 = vmul.f32 %v1027_v38, %v932_v35  ;;  %v1155_v41 = vmul.f32 %v1022_v39, %v931_v36  ;;  %2159 = vmatprep.mubr.bf16.mxu1 %v1191_v37  ;;  %v955_v35 = vld [vmem:[#allocation2 + $0xf0] sm:$0xff] }
 0x217   : > { %v1184_v44 = vpack.c.bf16 %v1156_v40, %v1155_v41 }
 0x218   : > { %v1107_v45 = vpop.permute.xlu1 %1106  ;;  %v1102_v46 = vpop.permute.xlu0 %1101 }
 0x219   : > { %v1172_v47 = vmul.f32 %v1107_v45, %v948_v42  ;;  %v1171_v48 = vmul.f32 %v1102_v46, %v947_v43  ;;  %2144 = vmatmul.mubr.bf16.gmra.mrb[4].mxu0 %v1184_v44  ;;  %v2859_v42 = vld [vmem:[%s2985_s4] ss:$0 sm:$0xff] }
 0x21b   : > { %v1192_v51 = vpack.c.bf16 %v1172_v47, %v1171_v48 }
 0x21c   : > { %v1037_v52 = vpop.permute.xlu1 %1036  ;;  %v1032_v53 = vpop.permute.xlu0 %1031 }
 0x21d   : > { %v1158_v54 = vmul.f32 %v1037_v52, %v934_v49  ;;  %v1157_v55 = vmul.f32 %v1032_v53, %v933_v50  ;;  %2160 = vmatmul.mubr.bf16.gmra.mrb[4].mxu1 %v1192_v51 }
 0x21f   : > { %v1185_v58 = vpack.c.bf16 %v1158_v54, %v1157_v55 }
 0x220   : > { %v1117_v59 = vpop.permute.xlu1 %1116  ;;  %v1112_v60 = vpop.permute.xlu0 %1111 }
 0x221   : > { %v1174_v61 = vmul.f32 %v1117_v59, %v950_v56  ;;  %v1173_v62 = vmul.f32 %v1112_v60, %v949_v57  ;;  %2147 = vmatprep.mubr.bf16.mxu0 %v1185_v58 }
 0x223   : > { %v1193_v1 = vpack.c.bf16 %v1174_v61, %v1173_v62 }
 0x224   : > { %v1047_v2 = vpop.permute.xlu1 %1046  ;;  %v1042_v3 = vpop.permute.xlu0 %1041 }
 0x225   : > { %v1160_v4 = vmul.f32 %v1047_v2, %v936_v63  ;;  %v1159_v5 = vmul.f32 %v1042_v3, %v935_v0  ;;  %2163 = vmatprep.mubr.bf16.mxu1 %v1193_v1 }
 0x227   : > { %v1186_v8 = vpack.c.bf16 %v1160_v4, %v1159_v5 }
 0x228   : > { %v1127_v9 = vpop.permute.xlu1 %1126  ;;  %v1122_v10 = vpop.permute.xlu0 %1121 }
 0x229   : > { %v1176_v11 = vmul.f32 %v1127_v9, %v952_v6  ;;  %v1175_v12 = vmul.f32 %v1122_v10, %v951_v7  ;;  %2148 = vmatmul.mubr.bf16.gmra.mrb[8].mxu0 %v1186_v8 }
 0x22b   : > { %v1194_v15 = vpack.c.bf16 %v1176_v11, %v1175_v12 }
 0x22c   : > { %v1057_v16 = vpop.permute.xlu1 %1056  ;;  %v1052_v17 = vpop.permute.xlu0 %1051 }
 0x22d   : > { %v1162_v18 = vmul.f32 %v1057_v16, %v938_v13  ;;  %v1161_v19 = vmul.f32 %v1052_v17, %v937_v14  ;;  %2164 = vmatmul.mubr.bf16.gmra.mrb[8].mxu1 %v1194_v15 }
 0x22f   : > { %v1187_v22 = vpack.c.bf16 %v1162_v18, %v1161_v19 }
 0x230   : > { %v1137_v23 = vpop.permute.xlu1 %1136  ;;  %v1132_v24 = vpop.permute.xlu0 %1131 }
 0x231   : > { %v1178_v25 = vmul.f32 %v1137_v23, %v954_v20  ;;  %v1177_v26 = vmul.f32 %v1132_v24, %v953_v21  ;;  %2151 = vmatprep.mubr.bf16.mxu0 %v1187_v22 }
 0x233   : > { %v1195_v29 = vpack.c.bf16 %v1178_v25, %v1177_v26 }
 0x234   : > { %v1067_v30 = vpop.permute.xlu1 %1066  ;;  %v1062_v31 = vpop.permute.xlu0 %1061 }
 0x235   : > { %v1164_v32 = vmul.f32 %v1067_v30, %v940_v27  ;;  %v1163_v33 = vmul.f32 %v1062_v31, %v939_v28  ;;  %2167 = vmatprep.mubr.bf16.mxu1 %v1195_v29 }
 0x237   : > { %v1188_v36 = vpack.c.bf16 %v1164_v32, %v1163_v33 }
 0x238   : > { %v1147_v37 = vpop.permute.xlu1 %1146  ;;  %v1142_v38 = vpop.permute.xlu0 %1141 }
 0x239   : > { %v1180_v39 = vmul.f32 %v1147_v37, %v956_v34  ;;  %v1179_v40 = vmul.f32 %v1142_v38, %v955_v35  ;;  %2152 = vmatmul.mubr.bf16.gmra.mrb[12].mxu0 %v1188_v36 }
 0x23b   : > { %v1196_v41 = vpack.c.bf16 %v1180_v39, %v1179_v40 }
 0x23d   : > { %2168 = vmatmul.mubr.bf16.gmra.mrb[12].mxu1 %v1196_v41 }
 0x2dc   : > { %v2141_v43 = vpop.f32.mrb[0].mxu0 }
 0x2dd   : > { %v1311_v44 = vadd.f32 %v2141_v43, %v2859_v42  ;;  %v1302_v45 = vpop.f32.mrb[1].mxu0 }
 0x2de   : > { %v1303_v46 = vadd.f32 %v2859_v42, %v1302_v45  ;;  %v2142_v47 = vpop.f32.mrb[2].mxu0 }
 0x2df   : > { %v1314_v48 = vadd.f32 %v2142_v47, %v2859_v42  ;;  %v1305_v49 = vpop.f32.mrb[3].mxu0  ;;  %v1431_v52 = vmax.f32 %v1311_v44, 0.0 }
 0x2e0   : > { %v1306_v50 = vadd.f32 %v2859_v42, %v1305_v49  ;;  %v2157_v51 = vpop.f32.mrb[0].mxu1  ;;  %v1429_v56 = vmax.f32 %v1303_v46, 0.0 }
 0x2e1   : > { %v1432_v53 = vmax.f32 %v1314_v48, 0.0  ;;  %v1375_v54 = vadd.f32 %v2157_v51, %v2859_v42  ;;  %v1366_v55 = vpop.f32.mrb[1].mxu1 }
 0x2e2   : > { %v1430_v57 = vmax.f32 %v1306_v50, 0.0  ;;  %v1367_v58 = vadd.f32 %v2859_v42, %v1366_v55  ;;  %v2158_v59 = vpop.f32.mrb[2].mxu1 }
 0x2e3   : > { %v1900_v60 = vpack.c.bf16 %v1432_v53, %v1431_v52  ;;  %v1378_v61 = vadd.f32 %v2158_v59, %v2859_v42  ;;  %v1369_v62 = vpop.f32.mrb[3].mxu1  ;;  %v1447_v1 = vmax.f32 %v1375_v54, 0.0 }
 0x2e4   : > { %v1895_v63 = vpack.c.bf16 %v1430_v57, %v1429_v56  ;;  %v1370_v0 = vadd.f32 %v2859_v42, %v1369_v62  ;;  %v1445_v3 = vmax.f32 %v1367_v58, 0.0 }
 0x2e5   : > { %1972 = vst [vmem:[%s2748_s29 + $0x8] sm:$0xff] %v1900_v60   ;;  %v1448_v2 = vmax.f32 %v1378_v61, 0.0 }
 0x2e6   : > { %1896 = vst [vmem:[%s2748_s29] sm:$0xff] %v1895_v63   ;;  %v1446_v4 = vmax.f32 %v1370_v0, 0.0 }
 0x2e7   : > { %v1940_v5 = vpack.c.bf16 %v1448_v2, %v1447_v1 }
 0x2e8   : > { %v1935_v6 = vpack.c.bf16 %v1446_v4, %v1445_v3 }
 0x2e9   : > { %1980 = vst [vmem:[%s2748_s29 + $0x48] sm:$0xff] %v1940_v5  }
 0x2ea   : > { %1979 = vst [vmem:[%s2748_s29 + $0x40] sm:$0xff] %v1935_v6  }
 0x2ec   : > { %v2145_v7 = vpop.f32.mrb[4].mxu0 }
 0x2ed   : > { %v1327_v8 = vadd.f32 %v2145_v7, %v2859_v42  ;;  %v1318_v9 = vpop.f32.mrb[5].mxu0 }
 0x2ee   : > { %v1319_v10 = vadd.f32 %v2859_v42, %v1318_v9  ;;  %v2146_v11 = vpop.f32.mrb[6].mxu0 }
 0x2ef   : > { %v1330_v12 = vadd.f32 %v2146_v11, %v2859_v42  ;;  %v1321_v13 = vpop.f32.mrb[7].mxu0  ;;  %v1435_v16 = vmax.f32 %v1327_v8, 0.0 }
 0x2f0   : > { %v1322_v14 = vadd.f32 %v2859_v42, %v1321_v13  ;;  %v2161_v15 = vpop.f32.mrb[4].mxu1  ;;  %v1433_v20 = vmax.f32 %v1319_v10, 0.0 }
 0x2f1   : > { %v1436_v17 = vmax.f32 %v1330_v12, 0.0  ;;  %v1391_v18 = vadd.f32 %v2161_v15, %v2859_v42  ;;  %v1382_v19 = vpop.f32.mrb[5].mxu1 }
 0x2f2   : > { %v1434_v21 = vmax.f32 %v1322_v14, 0.0  ;;  %v1383_v22 = vadd.f32 %v2859_v42, %v1382_v19  ;;  %v2162_v23 = vpop.f32.mrb[6].mxu1 }
 0x2f3   : > { %v1910_v24 = vpack.c.bf16 %v1436_v17, %v1435_v16  ;;  %v1394_v25 = vadd.f32 %v2162_v23, %v2859_v42  ;;  %v1385_v26 = vpop.f32.mrb[7].mxu1  ;;  %v1451_v29 = vmax.f32 %v1391_v18, 0.0 }
 0x2f4   : > { %v1905_v27 = vpack.c.bf16 %v1434_v21, %v1433_v20  ;;  %v1386_v28 = vadd.f32 %v2859_v42, %v1385_v26  ;;  %v1449_v31 = vmax.f32 %v1383_v22, 0.0 }
 0x2f5   : > { %1974 = vst [vmem:[%s2748_s29 + $0x18] sm:$0xff] %v1910_v24   ;;  %v1452_v30 = vmax.f32 %v1394_v25, 0.0 }
 0x2f6   : > { %1973 = vst [vmem:[%s2748_s29 + $0x10] sm:$0xff] %v1905_v27   ;;  %v1450_v32 = vmax.f32 %v1386_v28, 0.0 }
 0x2f7   : > { %v1950_v33 = vpack.c.bf16 %v1452_v30, %v1451_v29 }
 0x2f8   : > { %v1945_v34 = vpack.c.bf16 %v1450_v32, %v1449_v31 }
 0x2f9   : > { %1982 = vst [vmem:[%s2748_s29 + $0x58] sm:$0xff] %v1950_v33  }
 0x2fa   : > { %1981 = vst [vmem:[%s2748_s29 + $0x50] sm:$0xff] %v1945_v34  }
 0x2fc   : > { %v2149_v35 = vpop.f32.mrb[8].mxu0 }
 0x2fd   : > { %v1343_v36 = vadd.f32 %v2149_v35, %v2859_v42  ;;  %v1334_v37 = vpop.f32.mrb[9].mxu0 }
 0x2fe   : > { %v1335_v38 = vadd.f32 %v2859_v42, %v1334_v37  ;;  %v2150_v39 = vpop.f32.mrb[10].mxu0 }
 0x2ff   : > { %v1346_v40 = vadd.f32 %v2150_v39, %v2859_v42  ;;  %v1337_v41 = vpop.f32.mrb[11].mxu0  ;;  %v1439_v45 = vmax.f32 %v1343_v36, 0.0 }
 0x300   : > { %v1338_v43 = vadd.f32 %v2859_v42, %v1337_v41  ;;  %v2165_v44 = vpop.f32.mrb[8].mxu1  ;;  %v1437_v49 = vmax.f32 %v1335_v38, 0.0 }
 0x301   : > { %v1440_v46 = vmax.f32 %v1346_v40, 0.0  ;;  %v1407_v47 = vadd.f32 %v2165_v44, %v2859_v42  ;;  %v1398_v48 = vpop.f32.mrb[9].mxu1 }
 0x302   : > { %v1438_v50 = vmax.f32 %v1338_v43, 0.0  ;;  %v1399_v51 = vadd.f32 %v2859_v42, %v1398_v48  ;;  %v2166_v52 = vpop.f32.mrb[10].mxu1 }
 0x303   : > { %v1920_v53 = vpack.c.bf16 %v1440_v46, %v1439_v45  ;;  %v1410_v54 = vadd.f32 %v2166_v52, %v2859_v42  ;;  %v1401_v55 = vpop.f32.mrb[11].mxu1  ;;  %v1455_v58 = vmax.f32 %v1407_v47, 0.0 }
 0x304   : > { %v1915_v56 = vpack.c.bf16 %v1438_v50, %v1437_v49  ;;  %v1402_v57 = vadd.f32 %v2859_v42, %v1401_v55  ;;  %v1453_v60 = vmax.f32 %v1399_v51, 0.0 }
 0x305   : > { %1976 = vst [vmem:[%s2748_s29 + $0x28] sm:$0xff] %v1920_v53   ;;  %v1456_v59 = vmax.f32 %v1410_v54, 0.0 }
 0x306   : > { %1975 = vst [vmem:[%s2748_s29 + $0x20] sm:$0xff] %v1915_v56   ;;  %v1454_v61 = vmax.f32 %v1402_v57, 0.0 }
 0x307   : > { %v1960_v62 = vpack.c.bf16 %v1456_v59, %v1455_v58 }
 0x308   : > { %v1955_v63 = vpack.c.bf16 %v1454_v61, %v1453_v60 }
 0x309   : > { %1984 = vst [vmem:[%s2748_s29 + $0x68] sm:$0xff] %v1960_v62  }
 0x30a   : > { %1983 = vst [vmem:[%s2748_s29 + $0x60] sm:$0xff] %v1955_v63  }
 0x30c   : > { %v2153_v0 = vpop.f32.mrb[12].mxu0 }
 0x30d   : > { %v1359_v1 = vadd.f32 %v2153_v0, %v2859_v42  ;;  %v1350_v2 = vpop.f32.mrb[13].mxu0 }
 0x30e   : > { %v1351_v3 = vadd.f32 %v2859_v42, %v1350_v2  ;;  %v2154_v4 = vpop.f32.mrb[14].mxu0 }
 0x30f   : > { %v1362_v5 = vadd.f32 %v2154_v4, %v2859_v42  ;;  %v1353_v6 = vpop.f32.mrb[15].mxu0  ;;  %v1443_v9 = vmax.f32 %v1359_v1, 0.0 }
 0x310   : > { %v1354_v7 = vadd.f32 %v2859_v42, %v1353_v6  ;;  %v2169_v8 = vpop.f32.mrb[12].mxu1  ;;  %v1441_v13 = vmax.f32 %v1351_v3, 0.0 }
 0x311   : > { %v1444_v10 = vmax.f32 %v1362_v5, 0.0  ;;  %v1423_v11 = vadd.f32 %v2169_v8, %v2859_v42  ;;  %v1414_v12 = vpop.f32.mrb[13].mxu1 }
 0x312   : > { %v1442_v14 = vmax.f32 %v1354_v7, 0.0  ;;  %v1415_v15 = vadd.f32 %v2859_v42, %v1414_v12  ;;  %v2170_v16 = vpop.f32.mrb[14].mxu1 }
 0x313   : > { %v1930_v17 = vpack.c.bf16 %v1444_v10, %v1443_v9  ;;  %v1426_v18 = vadd.f32 %v2170_v16, %v2859_v42  ;;  %v1417_v19 = vpop.f32.mrb[15].mxu1  ;;  %v1459_v22 = vmax.f32 %v1423_v11, 0.0 }
 0x314   : > { %v1925_v20 = vpack.c.bf16 %v1442_v14, %v1441_v13  ;;  %v1418_v21 = vadd.f32 %v2859_v42, %v1417_v19  ;;  %v1457_v24 = vmax.f32 %v1415_v15, 0.0 }
 0x315   : > { %1978 = vst [vmem:[%s2748_s29 + $0x38] sm:$0xff] %v1930_v17   ;;  %v1460_v23 = vmax.f32 %v1426_v18, 0.0 }
 0x316   : > { %1977 = vst [vmem:[%s2748_s29 + $0x30] sm:$0xff] %v1925_v20   ;;  %v1458_v25 = vmax.f32 %v1418_v21, 0.0 }
 0x317   : > { %v1970_v26 = vpack.c.bf16 %v1460_v23, %v1459_v22 }
 0x318   : > { %v1965_v27 = vpack.c.bf16 %v1458_v25, %v1457_v24 }
 0x319   : > { %1986 = vst [vmem:[%s2748_s29 + $0x78] sm:$0xff] %v1970_v26  }
 0x31a   : > { %1985 = vst [vmem:[%s2748_s29 + $0x70] sm:$0xff] %v1965_v27  }
 0x31b PF: > { %s1891_s30 = sshll.u32 %s2526_s25, 11  ;;  %s3003_s17 = sld [smem:[#allocation13_spill]] }
 0x31c   : > { %s1635_s9 = sshll.u32 %s2748_s29, 4  ;;  %s2920_s13 = scalar_lea.sflag [#allocation5], %s289_s23  ;;  %s2916_s9 = int_to_ptr.vmem [resolvable:$true] %s1635_s9 }
 0x31d   : > { %s2416_s24 = scalar_lea.vmem %s2916_s9, 2048  ;;  %p3004_p1 = scmp.ne.s32.totalorder %s2998_s15, 0 }
 0x31e   : > { %p2417_p0 = scmp.ne.s32.totalorder %s2916_s9, %s2416_s24  ;;  %s2546_s25 = smov [#allocation6]  }
 0x31f   : > { %s2420_s11 = sshll.u32 %s2546_s25, 4  ;;  %s2421_s11 = int_to_ptr.vmem [resolvable:$false] %s2420_s11 }
 0x320   : > { %p2418_p6 = pnand %p2417_p0, %p3004_p1  ;;  %s2422_s6 = scalar_lea.vmem %s2421_s11, 4096 }
 0x321   : > { %s2913_s12 = scalar_lea.hbm %s3003_s17, %s1891_s30  ;;  %p2423_p10 = scmp.lt.s32.totalorder %s2916_s9, %s2421_s11 }
 0x322   : > { %p2419_p8 = pneg %p2418_p6  ;;  %p2424_p11 = scmp.lt.s32.totalorder %s2422_s6, %s2416_s24 }
 0x324   : > { %p2425_p13 = por %p2424_p11, %p2423_p10 }
 0x326   : > { %p2426_p5 = pnand %p2425_p13, %p2419_p8 }
 0x328   : > { %2429 = shalt.err (!%p2426_p5)
}
 0x329   : > { %s2430_s23 = scalar_lea.hbm %s2913_s12, 2048  ;;  %s2434_s14 = scalar_lea.hbm %s3003_s17, 4096 }
 0x32a   : > { %p2431_p3 = scmp.ne.s32.totalorder %s2913_s12, %s2430_s23  ;;  %p2435_p2 = scmp.lt.u32.totalorder %s2913_s12, %s3003_s17 }
 0x32b   : > { %p2436_p7 = scmp.lt.u32.totalorder %s2434_s14, %s2430_s23  ;;  %p2438_p0 = scmp.lt.u32.totalorder %s2430_s23, %s2913_s12 }
 0x32c   : > { %p2432_p9 = pnand %p2431_p3, %p3004_p1 }
 0x32d   : > { %p2437_p4 = por %p2436_p7, %p2435_p2 }
 0x32e   : > { %p2433_p12 = pneg %p2432_p9 }
 0x32f   : > { %p2439_p6 = por %p2438_p0, %p2437_p4 }
 0x331   : > { %p2440_p8 = pnand %p2439_p6, %p2433_p12 }
 0x333   : > { %2443 = shalt.err (!%p2440_p8)
}
 0x334   : > { %s2547_s10 = smov 64   ;;  %s2548_s5 = smov 4  }
 0x335   : > { %2205 = dma.vmem_to_hbm [thread:$0]  (%p3004_p1), %s2916_s9, 2048, %s2913_s12, %s2920_s13, %s2547_s10, %s2547_s10, %s2548_s5  }
 0x336 PF: > { %p2216_p10 = scmp.ge.s32.totalorder %s2538_s28, 2  ;;  %s1650_s24 = sand.u32 1, %s2498_s18  }
 0x337   : > { %p3005_p11 = scmp.ne.s32.totalorder %s3000_s21, 0  ;;  %s1651_s25 = scalar_lea.sflag [#allocation5], %s1650_s24 }
 0x339   : > { %p2212_p13 = pnand %p2216_p10, %p3005_p11 }
 0x33b   : > { %2493 = dma.done.wait (!%p2212_p13), %s1651_s25, 2048  }
 0x33c   : > { %2495 = vsyncadd (!%p2212_p13), %s1651_s25, 4294965248  ;;  %s21_s28 = sadd.s32 1, %s2538_s28   ;;  %s3006_s15 = sld [smem:[#allocation9_spill]] }
 0x33d   : > { %p18_p5 = scmp.ge.s32.totalorder %s21_s28, 6   ;;  %s3007_s23 = sld [smem:[#allocation12_spill]] }
 0x33e   : > { %s3008_s12 = sld [smem:[#allocation10_spill]]  ;;  %s3009_s9 = sld [smem:[#allocation11_spill]] }
 0x33f   : > { %s3010_s18 = smov %s2502_s19  ;;  %s3011_s19 = smov %s2506_s20 }
 0x340   : > { %s3012_s20 = smov %s2666_s16  ;;  %s3013_s21 = smov %s2514_s22 }
 0x341   : > { %s3015_s24 = smov %s2530_s26  ;;  %s3016_s25 = smov %s2534_s27 }
 0x342   : > { %s3014_s22 = smov %s3006_s15  ;;  %20 = sbr.rel (!%p18_p5) target bundleno = 11 (0xb), region = 99 }
 0x344   : > { %s3017_s26 = smov %s3008_s12  ;;  %s3018_s27 = smov %s3009_s9 }
 0x349   :  { %1656 = vsyncpa [#allocation4], 1 }
 0x34a   :  { %1658 = vsyncpa [#allocation4 + $0x1], 1 }
 0x34b   :  { %1659 = vsyncpa [#allocation5], 1 }
 0x34c   :  { %1661 = vsyncpa [#allocation5 + $0x1], 1 }

</bundles_post_ra>
